<compile_context>
chip_gen: v7x
topology: tpu7x:2x2x1
jax: 0.10.0
libtpu: 0.0.40
codegen_flags: <defaults>
</compile_context>

<pallas_src>
import functools

import jax
import jax.numpy as jnp
from jax.experimental import pallas as pl
from jax.experimental.pallas import tpu as pltpu


def _inner_product_sigmoid_kernel(zrow_ref, zfull_ref, o_ref):
    # zrow_ref : (tm, D)     -- rows of z for this output slab (pipelined)
    # zfull_ref: (n_pad, D)  -- full (padded) z, resident in VMEM across grid
    # o_ref    : (tm, n_pad) -- one lane-dense row-slab of adj = sigmoid(z @ z.T)
    logits = jax.lax.dot_general(
        zrow_ref[...],
        zfull_ref[...],
        dimension_numbers=(((1,), (1,)), ((), ())),   # 'md,nd->mn' (no .T / XLU)
        preferred_element_type=jnp.float32,
    )
    # Sigmoid in f32 (EUP path), cast only at the store.
    o_ref[...] = jax.nn.sigmoid(logits).astype(o_ref.dtype)


def _round_up(x, m):
    return (x + m - 1) // m * m


def _choose_tile(n_pad, tm):
    # Largest power-of-two tile <= tm that divides n_pad (n_pad is a multiple
    # of 128, so this bottoms out at >= 128).
    t = min(tm, n_pad)
    while n_pad % t:
        t //= 2
    return max(t, 8)


@functools.partial(jax.jit, static_argnames=("tm", "out_dtype"))
def inner_product_sigmoid(z, *, tm=256, out_dtype=jnp.float32):
    """adj = sigmoid(z @ z.T) via a Pallas TPU kernel (full z resident in VMEM)."""
    n, d = z.shape
    n_pad = _round_up(n, 128)
    tm_eff = _choose_tile(n_pad, tm)

    if n_pad != n:
        # Zero-padded rows only touch padded output rows/cols, sliced off below.
        z = jnp.pad(z, ((0, n_pad - n), (0, 0)))

    grid = (n_pad // tm_eff,)

    # VMEM plan: double-buffered output slab + double-buffered row tile +
    # resident full z (+ headroom).
    out_itemsize = jnp.dtype(out_dtype).itemsize
    z_itemsize = z.dtype.itemsize
    needed = (2 * tm_eff * n_pad * out_itemsize
              + 2 * tm_eff * d * z_itemsize
              + 2 * n_pad * d * z_itemsize
              + (2 << 20))
    # Keep at least the 16 MiB default floor; cap at v7x's 64 MiB physical VMEM.
    vmem_limit = int(min(max(needed, 16 * 1024 * 1024), 64 * 1024 * 1024))
    # TODO(synk): for very large N (resident-z plan > ~64 MiB) switch to a 2-D
    # grid with a wide (<=2048) lane-dense column tile instead of full-z residency.

    out = pl.pallas_call(
        _inner_product_sigmoid_kernel,
        out_shape=jax.ShapeDtypeStruct((n_pad, n_pad), out_dtype),
        grid_spec=pl.GridSpec(
            grid=grid,
            in_specs=[
                # Pipelined row tile for this slab.
                pl.BlockSpec((tm_eff, d), lambda i: (i, 0)),
                # Constant block index -> z fetched from HBM once, then resident.
                pl.BlockSpec((n_pad, d), lambda i: (0, 0)),
            ],
            out_specs=pl.BlockSpec((tm_eff, n_pad), lambda i: (i, 0)),
        ),
        compiler_params=pltpu.CompilerParams(
            dimension_semantics=("parallel",),   # row slabs shard across TCs (v7x)
            vmem_limit_bytes=vmem_limit,
        ),
    )(z, z)

    if n_pad != n:
        out = out[:n, :n]
    return out


def inner_product_decoder(z, *, dropout=0.0, training=False, key=None,
                          tm=256, out_dtype=jnp.float32):
    """Forward of InnerProductDecoder.

    Dropout is the cheap elementwise prologue (plain JAX glue); the matmul +
    sigmoid hot path runs in the Pallas kernel.
    """
    if training and dropout > 0.0:
        assert key is not None, "dropout in training mode needs a PRNG key"
        keep = 1.0 - dropout
        mask = jax.random.bernoulli(key, keep, z.shape)
        z = jnp.where(mask, z / keep, 0.0).astype(z.dtype)
    return inner_product_sigmoid(z, tm=tm, out_dtype=out_dtype)


if __name__ == "__main__":
    key = jax.random.PRNGKey(0)
    k_z, k_drop, k_z2 = jax.random.split(key, 3)

    # Small-but-representative shapes: N=512 nodes, D=64 latent features.
    N, D = 512, 64
    z = jax.random.normal(k_z, (N, D), dtype=jnp.float32)

    # Inference-mode forward (dropout inactive), matching module.eval().
    adj = inner_product_decoder(z, dropout=0.3, training=False)
    adj = jax.block_until_ready(adj)

    ref = jax.nn.sigmoid(z @ z.T)
    assert adj.shape == (N, N)
    assert jnp.max(jnp.abs(adj - ref)) < 1e-5

    # Non-multiple-of-128 N exercises the padding/slicing path.
    N2 = 300
    z2 = jax.random.normal(k_z2, (N2, D), dtype=jnp.float32)
    adj2 = jax.block_until_ready(inner_product_decoder(z2))
    ref2 = jax.nn.sigmoid(z2 @ z2.T)
    assert adj2.shape == (N2, N2)
    assert jnp.max(jnp.abs(adj2 - ref2)) < 1e-5

    # Training-mode forward (dropout active) also runs through the kernel.
    adj_train = jax.block_until_ready(
        inner_product_decoder(z, dropout=0.3, training=True, key=k_drop))
    assert adj_train.shape == (N, N)

    print("KERNEL_OK")
</pallas_src>

<mosaic_0001>
module attributes {stable_mosaic.version = 11 : i64} {
  func.func @_inner_product_sigmoid_kernel(%arg0: i32, %arg1: memref<256x64xf32, #tpu.memory_space<vmem>>, %arg2: memref<512x64xf32, #tpu.memory_space<vmem>>, %arg3: memref<256x512xf32, #tpu.memory_space<vmem>>) attributes {dimension_semantics = [#tpu.dimension_semantics<parallel>], iteration_bounds = array<i64: 2>, scalar_prefetch = 0 : i64, scratch_operands = 0 : i64, tpu.core_type = #tpu.core_type<tc>, window_params = [{transform_indices = @transform_0, window_bounds = array<i64: 256, 64>}, {pipeline_mode = #tpu.pipeline_mode<synchronous>, transform_indices = @transform_1, window_bounds = array<i64: 512, 64>}, {transform_indices = @transform_2, window_bounds = array<i64: 256, 512>}]} {
    %c0 = arith.constant 0 : index
    %c0_0 = arith.constant 0 : index
    %0 = vector.load %arg1[%c0, %c0_0] : memref<256x64xf32, #tpu.memory_space<vmem>>, vector<256x64xf32>
    %c0_1 = arith.constant 0 : index
    %c0_2 = arith.constant 0 : index
    %1 = vector.load %arg2[%c0_1, %c0_2] : memref<512x64xf32, #tpu.memory_space<vmem>>, vector<512x64xf32>
    %cst = arith.constant dense<0.000000e+00> : vector<256x512xf32>
    %2 = tpu.matmul %0, %1, %cst {dimension_numbers = #tpu.dot_dimension_numbers<[1], [1], [0], [0], [0, 0, 1, 0], [], []>} : vector<256x64xf32>, vector<512x64xf32>, vector<256x512xf32> -> vector<256x512xf32>
    %3 = arith.negf %2 : vector<256x512xf32>
    %4 = math.exp %3 : vector<256x512xf32>
    %cst_3 = arith.constant 1.000000e+00 : f32
    %5 = vector.broadcast %cst_3 : f32 to vector<256x512xf32>
    %6 = arith.addf %5, %4 : vector<256x512xf32>
    %7 = arith.divf %5, %6 : vector<256x512xf32>
    %c0_4 = arith.constant 0 : index
    %c0_5 = arith.constant 0 : index
    %8 = vector.load %arg3[%c0_4, %c0_5] : memref<256x512xf32, #tpu.memory_space<vmem>>, vector<256x512xf32>
    tpu.vector_store %arg3[%c0_4, %c0_5], %7 {strides = array<i32>} : memref<256x512xf32, #tpu.memory_space<vmem>>, vector<256x512xf32>,
    return
  }
  func.func @transform_0(%arg0: i32) -> (i32, i32) {
    %c0_i32 = arith.constant 0 : i32
    %c0_i32_0 = arith.constant 0 : i32
    return %arg0, %c0_i32 : i32, i32
  }
  func.func @transform_1(%arg0: i32) -> (i32, i32) {
    %c0_i32 = arith.constant 0 : i32
    %c0_i32_0 = arith.constant 0 : i32
    %c0_i32_1 = arith.constant 0 : i32
    return %c0_i32, %c0_i32_0 : i32, i32
  }
  func.func @transform_2(%arg0: i32) -> (i32, i32) {
    %c0_i32 = arith.constant 0 : i32
    %c0_i32_0 = arith.constant 0 : i32
    return %arg0, %c0_i32 : i32, i32
  }
}

</mosaic_0001>

<bundles_post_ra>
// kernel: inner_product_sigmoid.1
= control target key start
LH: loop header
LB: loop body
LE: loop exit
PB: predicated region body
PF: predicated region fallthrough
CT: control target
= control target key end

     0   :  { %7 = vsyncpa [#allocation3], 0  ;;  %s4187_s0 = inlined_call_operand.vmem [shape: f32[512,64], index: 0, kind: input, shape index: {}, may-alias: {0,1}]   ;;  %s4188_s1 = inlined_call_operand.vmem [shape: f32[512,64], index: 1, kind: input, shape index: {}, may-alias: {0,1}]   ;;  %s4189_s2 = inlined_call_operand.hbm [shape: f32[512,512], index: 2, kind: output, shape index: {}]  }
   0x1   :  { %9 = vsyncpa [#allocation3 + $0x1], 0  ;;  %s3211_s9 = smov 0   ;;  %s3213_s10 = smov 0  }
   0x2   :  { %s3215_s11 = smov 0   ;;  %s3217_s12 = smov 0  }
   0x3 LB: > { %s3232_s13 = sadd.s32 4294967295, %s3191_s12   ;;  %s2017_s14 = sadd.s32 4294967294, %s3191_s12   ;;  %s3191_s12 = sphi %s3217_s12, %s4223_s12   ;;  %s3187_s11 = sphi %s3215_s11, %s4222_s11   ;;  %s3183_s10 = sphi %s3213_s10, %s4221_s10   ;;  %s3179_s9 = sphi %s3211_s9, %s4220_s9  }
   0x4   : > { %s3236_s15 = sadd.s32 1, %s3191_s12   ;;  %s69_s16 = sadd.s32 1, %s3187_s11 }
   0x5   : > { %s66_s17 = ssub.s32 %s3191_s12, %s3236_s15  ;;  %p79_p0 = scmp.ne.s32.totalorder %s3187_s11, %s3183_s10 }
   0x6   : > { %p67_p1 = scmp.eq.s32.totalorder %s66_s17, 0  ;;  %p80_p2 = scmp.eq.s32.totalorder %s3232_s13, 1 }
   0x7   : > { %p85_p3 = scmp.ne.s32.totalorder %s3183_s10, %s3179_s9  ;;  %p86_p4 = scmp.eq.s32.totalorder %s2017_s14, 1 }
   0x8   : > { %s3247_s18 = scalar_select %p67_p1, %s3187_s11, %s69_s16  }
   0x9   : > { %p3249_p5 = por %p80_p2, %p79_p0  ;;  %p3253_p6 = por %p86_p4, %p85_p3 }
   0xa   : > { %p2020_p7 = scmp.ge.s32.totalorder %s3191_s12, 1  ;;  %p116_p8 = scmp.lt.s32.totalorder %s3191_s12, 3 }
   0xc   : > { %p117_p9 = pnand %p2020_p7, %p116_p8 }
   0xe   : > { %120 = sbr.rel (%p117_p9) target bundleno = 587 (0x24b), region = 28 }
  0x15   : > { %v193_v0 = vld [vmem:[%s4188_s1 + $0x80] sm:$0xff]  ;;  %v194_v1 = vld [vmem:[%s4188_s1 + $0x88] sm:$0xff]  ;;  %vm241_vm0 = vcmask 523264   ;;  %v195_v13 = vld [vmem:[%s4188_s1 + $0x90] sm:$0xff]  ;;  %s2022_s26 = sshll.u32 %s3232_s13, 5  ;;  %s3193_s6 = smov [#allocation2]  }
  0x16   : > { %v225_v2 = vld [vmem:[%s4188_s1 + $0x180] sm:$0xff]  ;;  %v2480_v3 = vpack.c.bf16 %v194_v1, %v193_v0  ;;  %vm3270_vm1 = vmpackc.low %vm241_vm0, %vm241_vm0  ;;  %v226_v5 = vld [vmem:[%s4188_s1 + $0x188] sm:$0xff]  ;;  %p139_p10 = scmp.lt.s32.totalorder %s2022_s26, 63  ;;  %s3133_s7 = sshll.u32 %s3193_s6, 4  ;;  %s3134_s7 = int_to_ptr.vmem [resolvable:$false] %s3133_s7 }
  0x17   : > { %v177_v6 = vld [vmem:[%s4188_s1] sm:$0xff]  ;;  %v2528_v7 = vpack.c.bf16 %v226_v5, %v225_v2  ;;  %v178_v8 = vld [vmem:[%s4188_s1 + $0x8] sm:$0xff]  ;;  %v196_v14 = vld [vmem:[%s4188_s1 + $0x98] sm:$0xff]  ;;  %s3135_s8 = scalar_lea.vmem %s3134_s7, 32768 }
  0x18   : > { %v209_v9 = vld [vmem:[%s4188_s1 + $0x100] sm:$0xff]  ;;  %v210_v10 = vld [vmem:[%s4188_s1 + $0x108] sm:$0xff]  ;;  %2482 = vmatprep.subr.msk.bf16.mxu0 %vm3270_vm1, %v2480_v3  ;;  %v2483_v11 = vpack.c.bf16 %v178_v8, %v177_v6  ;;  %v227_v15 = vld [vmem:[%s4188_s1 + $0x190] sm:$0xff]  ;;  %v2486_v16 = vpack.c.bf16 %v196_v14, %v195_v13  ;;  %s4225_s26 = smov (!%p139_p10, %s2022_s26), 63 }
  0x19   : > { %v2531_v12 = vpack.c.bf16 %v210_v10, %v209_v9  ;;  %2530 = vmatprep.subr.msk.bf16.mxu1 %vm3270_vm1, %v2528_v7  ;;  %v228_v17 = vld [vmem:[%s4188_s1 + $0x198] sm:$0xff]  ;;  %v179_v19 = vld [vmem:[%s4188_s1 + $0x10] sm:$0xff]  ;;  %v197_v23 = vld [vmem:[%s4188_s1 + $0xa0] sm:$0xff]  ;;  %s2023_s22 = sshll.u32 %s4225_s26, 3  ;;  %s2287_s26 = sshll.u32 %s3232_s13, 14 }
  0x1a   : > { %2485 = vmatpush3.bf16.xpose.msk.msra.mxu0 %vm3270_vm1, %v2483_v11  ;;  %v2534_v18 = vpack.c.bf16 %v228_v17, %v227_v15  ;;  %v180_v20 = vld [vmem:[%s4188_s1 + $0x18] sm:$0xff]  ;;  %v211_v21 = vld [vmem:[%s4188_s1 + $0x110] sm:$0xff]  ;;  %v198_v24 = vld [vmem:[%s4188_s1 + $0xa8] sm:$0xff]  ;;  %s3373_s25 = scalar_lea.vmem %s4187_s0, %s2023_s22  ;;  %s4137_s4 = scalar_lea.hbm %s4189_s2, %s2287_s26 }
  0x1b   : > { %2533 = vmatpush3.bf16.xpose.msk.msra.mxu1 %vm3270_vm1, %v2531_v12  ;;  %2488 = vmatprep.subr.msk.bf16.mxu0 %vm3270_vm1, %v2486_v16  ;;  %v212_v22 = vld [vmem:[%s4188_s1 + $0x118] sm:$0xff]  ;;  %v229_v25 = vld [vmem:[%s4188_s1 + $0x1a0] sm:$0xff]  ;;  %v230_v26 = vld [vmem:[%s4188_s1 + $0x1a8] sm:$0xff]  ;;  %v2489_v27 = vpack.c.bf16 %v180_v20, %v179_v19  ;;  %v2492_v29 = vpack.c.bf16 %v198_v24, %v197_v23 }
  0x1c   : > { %2536 = vmatprep.subr.msk.bf16.mxu1 %vm3270_vm1, %v2534_v18  ;;  %v2537_v28 = vpack.c.bf16 %v212_v22, %v211_v21  ;;  %v2540_v30 = vpack.c.bf16 %v230_v26, %v229_v25  ;;  %v181_v31 = vld [vmem:[%s4188_s1 + $0x20] sm:$0xff]  ;;  %v182_v32 = vld [vmem:[%s4188_s1 + $0x28] sm:$0xff]  ;;  %v199_v35 = vld [vmem:[%s4188_s1 + $0xb0] sm:$0xff] }
  0x1d   : > { %v213_v33 = vld [vmem:[%s4188_s1 + $0x120] sm:$0xff]  ;;  %v214_v34 = vld [vmem:[%s4188_s1 + $0x128] sm:$0xff]  ;;  %v200_v36 = vld [vmem:[%s4188_s1 + $0xb8] sm:$0xff]  ;;  %v2495_v39 = vpack.c.bf16 %v182_v32, %v181_v31 }
  0x1e   : > { %v231_v37 = vld [vmem:[%s4188_s1 + $0x1b0] sm:$0xff]  ;;  %v232_v38 = vld [vmem:[%s4188_s1 + $0x1b8] sm:$0xff]  ;;  %v2543_v40 = vpack.c.bf16 %v214_v34, %v213_v33  ;;  %v2498_v41 = vpack.c.bf16 %v200_v36, %v199_v35  ;;  %v3386_v45 = vld [vmem:[%s3373_s25] sm:$0xff] }
  0x1f   : > { %v2546_v42 = vpack.c.bf16 %v232_v38, %v231_v37  ;;  %v183_v43 = vld [vmem:[%s4188_s1 + $0x30] sm:$0xff]  ;;  %v184_v44 = vld [vmem:[%s4188_s1 + $0x38] sm:$0xff]  ;;  %v201_v48 = vld [vmem:[%s4188_s1 + $0xc0] sm:$0xff]  ;;  %2320 = vmatprep.mubr.msk.f32.mxu0 %vm241_vm0, %v3386_v45  ;;  %2416 = vmatprep.mubr.msk.f32.mxu1 %vm241_vm0, %v3386_v45 }
  0x20   : > { %v215_v46 = vld [vmem:[%s4188_s1 + $0x130] sm:$0xff]  ;;  %v216_v47 = vld [vmem:[%s4188_s1 + $0x138] sm:$0xff]  ;;  %v202_v49 = vld [vmem:[%s4188_s1 + $0xc8] sm:$0xff]  ;;  %v2501_v52 = vpack.c.bf16 %v184_v44, %v183_v43 }
  0x21   : > { %v233_v50 = vld [vmem:[%s4188_s1 + $0x1c0] sm:$0xff]  ;;  %v234_v51 = vld [vmem:[%s4188_s1 + $0x1c8] sm:$0xff]  ;;  %v2549_v53 = vpack.c.bf16 %v216_v47, %v215_v46  ;;  %v2504_v54 = vpack.c.bf16 %v202_v49, %v201_v48  ;;  %v203_v60 = vld [vmem:[%s4188_s1 + $0xd0] sm:$0xff] }
  0x22   : > { %2491 = vmatpush3.bf16.xpose.msk.msra.mxu0 %vm3270_vm1, %v2489_v27  ;;  %v2552_v55 = vpack.c.bf16 %v234_v51, %v233_v50  ;;  %v185_v56 = vld [vmem:[%s4188_s1 + $0x40] sm:$0xff]  ;;  %v186_v57 = vld [vmem:[%s4188_s1 + $0x48] sm:$0xff]  ;;  %v204_v61 = vld [vmem:[%s4188_s1 + $0xd8] sm:$0xff] }
  0x23   : > { %2539 = vmatpush3.bf16.xpose.msk.msra.mxu1 %vm3270_vm1, %v2537_v28  ;;  %2494 = vmatprep.subr.msk.bf16.mxu0 %vm3270_vm1, %v2492_v29  ;;  %v217_v58 = vld [vmem:[%s4188_s1 + $0x140] sm:$0xff]  ;;  %v218_v59 = vld [vmem:[%s4188_s1 + $0x148] sm:$0xff]  ;;  %v235_v62 = vld [vmem:[%s4188_s1 + $0x1d0] sm:$0xff]  ;;  %v2507_v0 = vpack.c.bf16 %v186_v57, %v185_v56  ;;  %v2510_v2 = vpack.c.bf16 %v204_v61, %v203_v60 }
  0x24   : > { %2542 = vmatprep.subr.msk.bf16.mxu1 %vm3270_vm1, %v2540_v30  ;;  %v236_v63 = vld [vmem:[%s4188_s1 + $0x1d8] sm:$0xff]  ;;  %v2555_v1 = vpack.c.bf16 %v218_v59, %v217_v58  ;;  %v187_v5 = vld [vmem:[%s4188_s1 + $0x50] sm:$0xff]  ;;  %v205_v9 = vld [vmem:[%s4188_s1 + $0xe0] sm:$0xff] }
  0x25   : > { %v2558_v3 = vpack.c.bf16 %v236_v63, %v235_v62  ;;  %v188_v6 = vld [vmem:[%s4188_s1 + $0x58] sm:$0xff]  ;;  %v219_v7 = vld [vmem:[%s4188_s1 + $0x150] sm:$0xff]  ;;  %v206_v10 = vld [vmem:[%s4188_s1 + $0xe8] sm:$0xff] }
  0x26   : > { %v220_v8 = vld [vmem:[%s4188_s1 + $0x158] sm:$0xff]  ;;  %v237_v11 = vld [vmem:[%s4188_s1 + $0x1e0] sm:$0xff]  ;;  %v238_v12 = vld [vmem:[%s4188_s1 + $0x1e8] sm:$0xff]  ;;  %v2513_v13 = vpack.c.bf16 %v188_v6, %v187_v5  ;;  %v2516_v15 = vpack.c.bf16 %v206_v10, %v205_v9 }
  0x27   : > { %v2561_v14 = vpack.c.bf16 %v220_v8, %v219_v7  ;;  %v2564_v16 = vpack.c.bf16 %v238_v12, %v237_v11  ;;  %v189_v17 = vld [vmem:[%s4188_s1 + $0x60] sm:$0xff]  ;;  %v190_v18 = vld [vmem:[%s4188_s1 + $0x68] sm:$0xff]  ;;  %v207_v21 = vld [vmem:[%s4188_s1 + $0xf0] sm:$0xff] }
  0x28   : > { %v221_v19 = vld [vmem:[%s4188_s1 + $0x160] sm:$0xff]  ;;  %v222_v20 = vld [vmem:[%s4188_s1 + $0x168] sm:$0xff]  ;;  %v208_v22 = vld [vmem:[%s4188_s1 + $0xf8] sm:$0xff]  ;;  %v2519_v25 = vpack.c.bf16 %v190_v18, %v189_v17 }
  0x29   : > { %v239_v23 = vld [vmem:[%s4188_s1 + $0x1f0] sm:$0xff]  ;;  %v240_v24 = vld [vmem:[%s4188_s1 + $0x1f8] sm:$0xff]  ;;  %v2567_v26 = vpack.c.bf16 %v222_v20, %v221_v19  ;;  %v2522_v27 = vpack.c.bf16 %v208_v22, %v207_v21  ;;  %v146_v35 = vld [vmem:[%s3373_s25 + $0x8] sm:$0xff] }
  0x2a   : > { %2497 = vmatpush3.bf16.xpose.msk.msra.mxu0 %vm3270_vm1, %v2495_v39  ;;  %v2570_v28 = vpack.c.bf16 %v240_v24, %v239_v23  ;;  %v191_v29 = vld [vmem:[%s4188_s1 + $0x70] sm:$0xff]  ;;  %v192_v30 = vld [vmem:[%s4188_s1 + $0x78] sm:$0xff]  ;;  %v149_v37 = vld [vmem:[%s3373_s25 + $0x20] sm:$0xff] }
  0x2b   : > { %2545 = vmatpush3.bf16.xpose.msk.msra.mxu1 %vm3270_vm1, %v2543_v40  ;;  %2500 = vmatprep.subr.msk.bf16.mxu0 %vm3270_vm1, %v2498_v41  ;;  %v223_v31 = vld [vmem:[%s4188_s1 + $0x170] sm:$0xff]  ;;  %v224_v32 = vld [vmem:[%s4188_s1 + $0x178] sm:$0xff]  ;;  %v2525_v33 = vpack.c.bf16 %v192_v30, %v191_v29  ;;  %v150_v38 = vld [vmem:[%s3373_s25 + $0x28] sm:$0xff] }
  0x2c   : > { %2548 = vmatprep.subr.msk.bf16.mxu1 %vm3270_vm1, %v2546_v42  ;;  %v2573_v34 = vpack.c.bf16 %v224_v32, %v223_v31  ;;  %v147_v36 = vld [vmem:[%s3373_s25 + $0x10] sm:$0xff]  ;;  %v148_v4 = vld [vmem:[%s3373_s25 + $0x18] sm:$0xff]  ;;  %v153_v41 = vld [vmem:[%s3373_s25 + $0x40] sm:$0xff] }
  0x2d   : > { %v151_v39 = vld [vmem:[%s3373_s25 + $0x30] sm:$0xff]  ;;  %v152_v40 = vld [vmem:[%s3373_s25 + $0x38] sm:$0xff]  ;;  %v154_v42 = vld [vmem:[%s3373_s25 + $0x48] sm:$0xff] }
  0x2e   : > { %v155_v43 = vld [vmem:[%s3373_s25 + $0x50] sm:$0xff]  ;;  %v156_v44 = vld [vmem:[%s3373_s25 + $0x58] sm:$0xff]  ;;  %v158_v46 = vld [vmem:[%s3373_s25 + $0x68] sm:$0xff] }
  0x2f   : > { %v159_v47 = vld [vmem:[%s3373_s25 + $0x70] sm:$0xff]  ;;  %v160_v48 = vld [vmem:[%s3373_s25 + $0x78] sm:$0xff]  ;;  %v161_v49 = vld [vmem:[%s3373_s25 + $0x80] sm:$0xff] }
  0x30   : > { %v162_v50 = vld [vmem:[%s3373_s25 + $0x88] sm:$0xff]  ;;  %v163_v51 = vld [vmem:[%s3373_s25 + $0x90] sm:$0xff]  ;;  %v168_v56 = vld [vmem:[%s3373_s25 + $0xb8] sm:$0xff] }
  0x31   : > { %v169_v57 = vld [vmem:[%s3373_s25 + $0xc0] sm:$0xff]  ;;  %v170_v58 = vld [vmem:[%s3373_s25 + $0xc8] sm:$0xff]  ;;  %v171_v59 = vld [vmem:[%s3373_s25 + $0xd0] sm:$0xff] }
  0x32   : > { %2503 = vmatpush3.bf16.xpose.msk.msra.mxu0 %vm3270_vm1, %v2501_v52  ;;  %v164_v52 = vld [vmem:[%s3373_s25 + $0x98] sm:$0xff]  ;;  %v173_v61 = vld [vmem:[%s3373_s25 + $0xe0] sm:$0xff]  ;;  %v174_v62 = vld [vmem:[%s3373_s25 + $0xe8] sm:$0xff] }
  0x33   : > { %2551 = vmatpush3.bf16.xpose.msk.msra.mxu1 %vm3270_vm1, %v2549_v53  ;;  %2506 = vmatprep.subr.msk.bf16.mxu0 %vm3270_vm1, %v2504_v54  ;;  %v165_v53 = vld [vmem:[%s3373_s25 + $0xa0] sm:$0xff]  ;;  %v166_v54 = vld [vmem:[%s3373_s25 + $0xa8] sm:$0xff]  ;;  %v172_v60 = vld [vmem:[%s3373_s25 + $0xd8] sm:$0xff] }
  0x34   : > { %2554 = vmatprep.subr.msk.bf16.mxu1 %vm3270_vm1, %v2552_v55  ;;  %v167_v55 = vld [vmem:[%s3373_s25 + $0xb0] sm:$0xff] }
  0x35   : > { %v175_v63 = vld [vmem:[%s3373_s25 + $0xf0] sm:$0xff] }
  0x3a   : > { %2509 = vmatpush3.bf16.xpose.msk.msra.mxu0 %vm3270_vm1, %v2507_v0  ;;  %v176_v0 = vld [vmem:[%s3373_s25 + $0xf8] sm:$0xff] }
  0x3b   : > { %2557 = vmatpush3.bf16.xpose.msk.msra.mxu1 %vm3270_vm1, %v2555_v1  ;;  %2512 = vmatprep.subr.msk.bf16.mxu0 %vm3270_vm1, %v2510_v2 }
  0x3c   : > { %2560 = vmatprep.subr.msk.bf16.mxu1 %vm3270_vm1, %v2558_v3 }
  0x42   : > { %2515 = vmatpush3.bf16.xpose.msk.msra.mxu0 %vm3270_vm1, %v2513_v13 }
  0x43   : > { %2563 = vmatpush3.bf16.xpose.msk.msra.mxu1 %vm3270_vm1, %v2561_v14  ;;  %2518 = vmatprep.subr.msk.bf16.mxu0 %vm3270_vm1, %v2516_v15 }
  0x44   : > { %2566 = vmatprep.subr.msk.bf16.mxu1 %vm3270_vm1, %v2564_v16 }
  0x4a   : > { %2521 = vmatpush3.bf16.xpose.msk.msra.mxu0 %vm3270_vm1, %v2519_v25 }
  0x4b   : > { %2569 = vmatpush3.bf16.xpose.msk.msra.mxu1 %vm3270_vm1, %v2567_v26  ;;  %2524 = vmatprep.subr.msk.bf16.mxu0 %vm3270_vm1, %v2522_v27 }
  0x4c   : > { %2572 = vmatprep.subr.msk.bf16.mxu1 %vm3270_vm1, %v2570_v28 }
  0x52   : > { %2527 = vmatpush3.bf16.xpose.msk.msra.mxu0 %vm3270_vm1, %v2525_v33 }
  0x53   : > { %2575 = vmatpush3.bf16.xpose.msk.msra.mxu1 %vm3270_vm1, %v2573_v34 }
  0x59   : > { %2321 = vmatmul.mubr.msk.f32.vlgmr.msra.gmra.mrb[0].mxu0 %vm241_vm0, %v3386_v45 }
  0x5a   : > { %2417 = vmatmul.mubr.msk.f32.vlgmr.msra.gmra.mrb[0].mxu1 %vm241_vm0, %v3386_v45  ;;  %2322 = vmatprep.mubr.msk.f32.mxu0 %vm241_vm0, %v146_v35  ;;  %v157_v45 = vld [vmem:[%s3373_s25 + $0x60] sm:$0xff]  ;;  %s135_s25 = sand.u32 1, %s3183_s10  }
  0x5b   : > { %2418 = vmatprep.mubr.msk.f32.mxu1 %vm241_vm0, %v146_v35  ;;  %s2021_s27 = sshll.u32 %s135_s25, 10  ;;  %s4146_s13 = scalar_lea.sflag [#allocation3], %s135_s25 }
  0x5c   : > { %s3702_s28 = scalar_lea.vmem [#allocation2], %s2021_s27 }
  0x5d   : > { %2323 = vmatmul.mubr.msk.f32.gmra.mrb[2].mxu0 %vm241_vm0, %v146_v35  ;;  %s1955_s29 = sshll.u32 %s3702_s28, 4  ;;  %s4139_s29 = int_to_ptr.vmem [resolvable:$true] %s1955_s29 }
  0x5e   : > { %2419 = vmatmul.mubr.msk.f32.gmra.mrb[2].mxu1 %vm241_vm0, %v146_v35  ;;  %2324 = vmatprep.mubr.msk.f32.mxu0 %vm241_vm0, %v147_v36  ;;  %s3129_s5 = scalar_lea.vmem %s4139_s29, 16384  ;;  %p3136_p0 = scmp.lt.s32.totalorder %s4139_s29, %s3134_s7 }
  0x5f   : > { %2420 = vmatprep.mubr.msk.f32.mxu1 %vm241_vm0, %v147_v36  ;;  %p3130_p11 = scmp.ne.s32.totalorder %s4139_s29, %s3129_s5  ;;  %p3137_p1 = scmp.lt.s32.totalorder %s3135_s8, %s3129_s5 }
  0x61   : > { %2325 = vmatmul.mubr.msk.f32.gmra.mrb[4].mxu0 %vm241_vm0, %v147_v36  ;;  %p3131_p12 = pnand %p3130_p11, %p3249_p5  ;;  %p3138_p2 = por %p3137_p1, %p3136_p0 }
  0x62   : > { %2421 = vmatmul.mubr.msk.f32.gmra.mrb[4].mxu1 %vm241_vm0, %v147_v36  ;;  %2326 = vmatprep.mubr.msk.f32.mxu0 %vm241_vm0, %v148_v4 }
  0x63   : > { %2422 = vmatprep.mubr.msk.f32.mxu1 %vm241_vm0, %v148_v4  ;;  %p3132_p13 = pneg %p3131_p12 }
  0x65   : > { %2327 = vmatmul.mubr.msk.f32.gmra.mrb[6].mxu0 %vm241_vm0, %v148_v4  ;;  %p3139_p3 = pnand %p3138_p2, %p3132_p13 }
  0x66   : > { %2423 = vmatmul.mubr.msk.f32.gmra.mrb[6].mxu1 %vm241_vm0, %v148_v4  ;;  %2328 = vmatprep.mubr.msk.f32.mxu0 %vm241_vm0, %v149_v37 }
  0x67   : > { %2424 = vmatprep.mubr.msk.f32.mxu1 %vm241_vm0, %v149_v37 }
  0x69   : > { %2329 = vmatmul.mubr.msk.f32.gmra.mrb[8].mxu0 %vm241_vm0, %v149_v37 }
  0x6a   : > { %2425 = vmatmul.mubr.msk.f32.gmra.mrb[8].mxu1 %vm241_vm0, %v149_v37  ;;  %2330 = vmatprep.mubr.msk.f32.mxu0 %vm241_vm0, %v150_v38 }
  0x6b   : > { %2426 = vmatprep.mubr.msk.f32.mxu1 %vm241_vm0, %v150_v38 }
  0x6d   : > { %2331 = vmatmul.mubr.msk.f32.gmra.mrb[10].mxu0 %vm241_vm0, %v150_v38 }
  0x6e   : > { %2427 = vmatmul.mubr.msk.f32.gmra.mrb[10].mxu1 %vm241_vm0, %v150_v38  ;;  %2332 = vmatprep.mubr.msk.f32.mxu0 %vm241_vm0, %v151_v39 }
  0x6f   : > { %2428 = vmatprep.mubr.msk.f32.mxu1 %vm241_vm0, %v151_v39 }
  0x71   : > { %2333 = vmatmul.mubr.msk.f32.gmra.mrb[12].mxu0 %vm241_vm0, %v151_v39 }
  0x72   : > { %2429 = vmatmul.mubr.msk.f32.gmra.mrb[12].mxu1 %vm241_vm0, %v151_v39  ;;  %2334 = vmatprep.mubr.msk.f32.mxu0 %vm241_vm0, %v152_v40 }
  0x73   : > { %2430 = vmatprep.mubr.msk.f32.mxu1 %vm241_vm0, %v152_v40 }
  0x75   : > { %2335 = vmatmul.mubr.msk.f32.gmra.mrb[14].mxu0 %vm241_vm0, %v152_v40 }
  0x76   : > { %2431 = vmatmul.mubr.msk.f32.gmra.mrb[14].mxu1 %vm241_vm0, %v152_v40  ;;  %2336 = vmatprep.mubr.msk.f32.mxu0 %vm241_vm0, %v153_v41 }
  0x77   : > { %2432 = vmatprep.mubr.msk.f32.mxu1 %vm241_vm0, %v153_v41 }
  0x79   : > { %2337 = vmatmul.mubr.msk.f32.gmra.mrb[16].mxu0 %vm241_vm0, %v153_v41 }
  0x7a   : > { %2433 = vmatmul.mubr.msk.f32.gmra.mrb[16].mxu1 %vm241_vm0, %v153_v41  ;;  %2338 = vmatprep.mubr.msk.f32.mxu0 %vm241_vm0, %v154_v42 }
  0x7b   : > { %2434 = vmatprep.mubr.msk.f32.mxu1 %vm241_vm0, %v154_v42 }
  0x7d   : > { %2339 = vmatmul.mubr.msk.f32.gmra.mrb[18].mxu0 %vm241_vm0, %v154_v42 }
  0x7e   : > { %2435 = vmatmul.mubr.msk.f32.gmra.mrb[18].mxu1 %vm241_vm0, %v154_v42  ;;  %2340 = vmatprep.mubr.msk.f32.mxu0 %vm241_vm0, %v155_v43 }
  0x7f   : > { %2436 = vmatprep.mubr.msk.f32.mxu1 %vm241_vm0, %v155_v43 }
  0x81   : > { %2341 = vmatmul.mubr.msk.f32.gmra.mrb[20].mxu0 %vm241_vm0, %v155_v43 }
  0x82   : > { %2437 = vmatmul.mubr.msk.f32.gmra.mrb[20].mxu1 %vm241_vm0, %v155_v43  ;;  %2342 = vmatprep.mubr.msk.f32.mxu0 %vm241_vm0, %v156_v44 }
  0x83   : > { %2438 = vmatprep.mubr.msk.f32.mxu1 %vm241_vm0, %v156_v44 }
  0x85   : > { %2343 = vmatmul.mubr.msk.f32.gmra.mrb[22].mxu0 %vm241_vm0, %v156_v44 }
  0x86   : > { %2439 = vmatmul.mubr.msk.f32.gmra.mrb[22].mxu1 %vm241_vm0, %v156_v44  ;;  %2344 = vmatprep.mubr.msk.f32.mxu0 %vm241_vm0, %v157_v45 }
  0x87   : > { %2440 = vmatprep.mubr.msk.f32.mxu1 %vm241_vm0, %v157_v45 }
  0x89   : > { %2345 = vmatmul.mubr.msk.f32.gmra.mrb[24].mxu0 %vm241_vm0, %v157_v45 }
  0x8a   : > { %2441 = vmatmul.mubr.msk.f32.gmra.mrb[24].mxu1 %vm241_vm0, %v157_v45  ;;  %2346 = vmatprep.mubr.msk.f32.mxu0 %vm241_vm0, %v158_v46 }
  0x8b   : > { %2442 = vmatprep.mubr.msk.f32.mxu1 %vm241_vm0, %v158_v46 }
  0x8d   : > { %2347 = vmatmul.mubr.msk.f32.gmra.mrb[26].mxu0 %vm241_vm0, %v158_v46 }
  0x8e   : > { %2443 = vmatmul.mubr.msk.f32.gmra.mrb[26].mxu1 %vm241_vm0, %v158_v46  ;;  %2348 = vmatprep.mubr.msk.f32.mxu0 %vm241_vm0, %v159_v47 }
  0x8f   : > { %2444 = vmatprep.mubr.msk.f32.mxu1 %vm241_vm0, %v159_v47 }
  0x91   : > { %2349 = vmatmul.mubr.msk.f32.gmra.mrb[28].mxu0 %vm241_vm0, %v159_v47 }
  0x92   : > { %2445 = vmatmul.mubr.msk.f32.gmra.mrb[28].mxu1 %vm241_vm0, %v159_v47  ;;  %2350 = vmatprep.mubr.msk.f32.mxu0 %vm241_vm0, %v160_v48 }
  0x93   : > { %2446 = vmatprep.mubr.msk.f32.mxu1 %vm241_vm0, %v160_v48 }
  0x95   : > { %2351 = vmatmul.mubr.msk.f32.gmra.mrb[30].mxu0 %vm241_vm0, %v160_v48 }
  0x96   : > { %2447 = vmatmul.mubr.msk.f32.gmra.mrb[30].mxu1 %vm241_vm0, %v160_v48  ;;  %2352 = vmatprep.mubr.msk.f32.mxu0 %vm241_vm0, %v161_v49 }
  0x97   : > { %2448 = vmatprep.mubr.msk.f32.mxu1 %vm241_vm0, %v161_v49 }
  0x99   : > { %2353 = vmatmul.mubr.msk.f32.gmra.mrb[32].mxu0 %vm241_vm0, %v161_v49 }
  0x9a   : > { %2449 = vmatmul.mubr.msk.f32.gmra.mrb[32].mxu1 %vm241_vm0, %v161_v49  ;;  %2354 = vmatprep.mubr.msk.f32.mxu0 %vm241_vm0, %v162_v50 }
  0x9b   : > { %2450 = vmatprep.mubr.msk.f32.mxu1 %vm241_vm0, %v162_v50 }
  0x9d   : > { %2355 = vmatmul.mubr.msk.f32.gmra.mrb[34].mxu0 %vm241_vm0, %v162_v50 }
  0x9e   : > { %2451 = vmatmul.mubr.msk.f32.gmra.mrb[34].mxu1 %vm241_vm0, %v162_v50  ;;  %2356 = vmatprep.mubr.msk.f32.mxu0 %vm241_vm0, %v163_v51 }
  0x9f   : > { %2452 = vmatprep.mubr.msk.f32.mxu1 %vm241_vm0, %v163_v51 }
  0xa1   : > { %2357 = vmatmul.mubr.msk.f32.gmra.mrb[36].mxu0 %vm241_vm0, %v163_v51 }
  0xa2   : > { %2453 = vmatmul.mubr.msk.f32.gmra.mrb[36].mxu1 %vm241_vm0, %v163_v51  ;;  %2358 = vmatprep.mubr.msk.f32.mxu0 %vm241_vm0, %v164_v52 }
  0xa3   : > { %2454 = vmatprep.mubr.msk.f32.mxu1 %vm241_vm0, %v164_v52 }
  0xa5   : > { %2359 = vmatmul.mubr.msk.f32.gmra.mrb[38].mxu0 %vm241_vm0, %v164_v52 }
  0xa6   : > { %2455 = vmatmul.mubr.msk.f32.gmra.mrb[38].mxu1 %vm241_vm0, %v164_v52  ;;  %2360 = vmatprep.mubr.msk.f32.mxu0 %vm241_vm0, %v165_v53 }
  0xa7   : > { %2456 = vmatprep.mubr.msk.f32.mxu1 %vm241_vm0, %v165_v53 }
  0xa9   : > { %2361 = vmatmul.mubr.msk.f32.gmra.mrb[40].mxu0 %vm241_vm0, %v165_v53 }
  0xaa   : > { %2457 = vmatmul.mubr.msk.f32.gmra.mrb[40].mxu1 %vm241_vm0, %v165_v53  ;;  %2362 = vmatprep.mubr.msk.f32.mxu0 %vm241_vm0, %v166_v54 }
  0xab   : > { %2458 = vmatprep.mubr.msk.f32.mxu1 %vm241_vm0, %v166_v54 }
  0xad   : > { %2363 = vmatmul.mubr.msk.f32.gmra.mrb[42].mxu0 %vm241_vm0, %v166_v54 }
  0xae   : > { %2459 = vmatmul.mubr.msk.f32.gmra.mrb[42].mxu1 %vm241_vm0, %v166_v54  ;;  %2364 = vmatprep.mubr.msk.f32.mxu0 %vm241_vm0, %v167_v55 }
  0xaf   : > { %2460 = vmatprep.mubr.msk.f32.mxu1 %vm241_vm0, %v167_v55 }
  0xb1   : > { %2365 = vmatmul.mubr.msk.f32.gmra.mrb[44].mxu0 %vm241_vm0, %v167_v55 }
  0xb2   : > { %2461 = vmatmul.mubr.msk.f32.gmra.mrb[44].mxu1 %vm241_vm0, %v167_v55  ;;  %2366 = vmatprep.mubr.msk.f32.mxu0 %vm241_vm0, %v168_v56 }
  0xb3   : > { %2462 = vmatprep.mubr.msk.f32.mxu1 %vm241_vm0, %v168_v56 }
  0xb5   : > { %2367 = vmatmul.mubr.msk.f32.gmra.mrb[46].mxu0 %vm241_vm0, %v168_v56 }
  0xb6   : > { %2463 = vmatmul.mubr.msk.f32.gmra.mrb[46].mxu1 %vm241_vm0, %v168_v56  ;;  %2368 = vmatprep.mubr.msk.f32.mxu0 %vm241_vm0, %v169_v57 }
  0xb7   : > { %2464 = vmatprep.mubr.msk.f32.mxu1 %vm241_vm0, %v169_v57 }
  0xb9   : > { %2369 = vmatmul.mubr.msk.f32.gmra.mrb[48].mxu0 %vm241_vm0, %v169_v57 }
  0xba   : > { %2465 = vmatmul.mubr.msk.f32.gmra.mrb[48].mxu1 %vm241_vm0, %v169_v57  ;;  %2370 = vmatprep.mubr.msk.f32.mxu0 %vm241_vm0, %v170_v58 }
  0xbb   : > { %2466 = vmatprep.mubr.msk.f32.mxu1 %vm241_vm0, %v170_v58 }
  0xbd   : > { %2371 = vmatmul.mubr.msk.f32.gmra.mrb[50].mxu0 %vm241_vm0, %v170_v58 }
  0xbe   : > { %2467 = vmatmul.mubr.msk.f32.gmra.mrb[50].mxu1 %vm241_vm0, %v170_v58  ;;  %2372 = vmatprep.mubr.msk.f32.mxu0 %vm241_vm0, %v171_v59 }
  0xbf   : > { %2468 = vmatprep.mubr.msk.f32.mxu1 %vm241_vm0, %v171_v59 }
  0xc1   : > { %2373 = vmatmul.mubr.msk.f32.gmra.mrb[52].mxu0 %vm241_vm0, %v171_v59 }
  0xc2   : > { %2469 = vmatmul.mubr.msk.f32.gmra.mrb[52].mxu1 %vm241_vm0, %v171_v59  ;;  %2374 = vmatprep.mubr.msk.f32.mxu0 %vm241_vm0, %v172_v60 }
  0xc3   : > { %2470 = vmatprep.mubr.msk.f32.mxu1 %vm241_vm0, %v172_v60 }
  0xc5   : > { %2375 = vmatmul.mubr.msk.f32.gmra.mrb[54].mxu0 %vm241_vm0, %v172_v60 }
  0xc6   : > { %2471 = vmatmul.mubr.msk.f32.gmra.mrb[54].mxu1 %vm241_vm0, %v172_v60  ;;  %2376 = vmatprep.mubr.msk.f32.mxu0 %vm241_vm0, %v173_v61 }
  0xc7   : > { %2472 = vmatprep.mubr.msk.f32.mxu1 %vm241_vm0, %v173_v61 }
  0xc9   : > { %2377 = vmatmul.mubr.msk.f32.gmra.mrb[56].mxu0 %vm241_vm0, %v173_v61 }
  0xca   : > { %2473 = vmatmul.mubr.msk.f32.gmra.mrb[56].mxu1 %vm241_vm0, %v173_v61  ;;  %2378 = vmatprep.mubr.msk.f32.mxu0 %vm241_vm0, %v174_v62 }
  0xcb   : > { %2474 = vmatprep.mubr.msk.f32.mxu1 %vm241_vm0, %v174_v62 }
  0xcd   : > { %2379 = vmatmul.mubr.msk.f32.gmra.mrb[58].mxu0 %vm241_vm0, %v174_v62 }
  0xce   : > { %2475 = vmatmul.mubr.msk.f32.gmra.mrb[58].mxu1 %vm241_vm0, %v174_v62  ;;  %2380 = vmatprep.mubr.msk.f32.mxu0 %vm241_vm0, %v175_v63 }
  0xcf   : > { %2476 = vmatprep.mubr.msk.f32.mxu1 %vm241_vm0, %v175_v63 }
  0xd1   : > { %2381 = vmatmul.mubr.msk.f32.gmra.mrb[60].mxu0 %vm241_vm0, %v175_v63 }
  0xd2   : > { %2477 = vmatmul.mubr.msk.f32.gmra.mrb[60].mxu1 %vm241_vm0, %v175_v63  ;;  %2382 = vmatprep.mubr.msk.f32.mxu0 %vm241_vm0, %v176_v0 }
  0xd3   : > { %2478 = vmatprep.mubr.msk.f32.mxu1 %vm241_vm0, %v176_v0 }
  0xd5   : > { %2383 = vmatmul.mubr.msk.f32.gmra.mrb[62].mxu0 %vm241_vm0, %v176_v0 }
  0xd6   : > { %2479 = vmatmul.mubr.msk.f32.gmra.mrb[62].mxu1 %vm241_vm0, %v176_v0 }
 0x12c   : > { %v596_v1 = vpop.f32.mrb[0].mxu0 }
 0x12d   : > { %v853_v2 = vpop.f32.mrb[0].mxu1  ;;  %v2152_v3 = vmul.f32 -1.442695, %v596_v1  ;;  %v598_v6 = vpop.f32.mrb[1].mxu0 }
 0x12e   : > { %v2154_v5 = vmul.f32 -1.442695, %v853_v2  ;;  %v855_v7 = vpop.f32.mrb[1].mxu1  ;;  %v2153_v8 = vmul.f32 -1.442695, %v598_v6 }
 0x12f   : > { %v2155_v9 = vmul.f32 -1.442695, %v855_v7  ;;  %2617 = vpow2.f32 %v2152_v3 }
 0x130   : > { %2619 = vpow2.f32 %v2154_v5  ;;  %v602_v10 = vpop.f32.mrb[2].mxu0 }
 0x131   : > { %v859_v11 = vpop.f32.mrb[2].mxu1  ;;  %2621 = vpow2.f32 %v2153_v8  ;;  %v2156_v12 = vmul.f32 -1.442695, %v602_v10  ;;  %v604_v14 = vpop.f32.mrb[3].mxu0 }
 0x132   : > { %v2158_v13 = vmul.f32 -1.442695, %v859_v11  ;;  %v861_v15 = vpop.f32.mrb[3].mxu1  ;;  %2623 = vpow2.f32 %v2155_v9  ;;  %v2157_v16 = vmul.f32 -1.442695, %v604_v14 }
 0x133   : > { %v2159_v17 = vmul.f32 -1.442695, %v861_v15  ;;  %2625 = vpow2.f32 %v2156_v12 }
 0x134   : > { %2627 = vpow2.f32 %v2158_v13  ;;  %v608_v18 = vpop.f32.mrb[4].mxu0 }
 0x135   : > { %v865_v19 = vpop.f32.mrb[4].mxu1  ;;  %2629 = vpow2.f32 %v2157_v16  ;;  %v2160_v20 = vmul.f32 -1.442695, %v608_v18  ;;  %v610_v22 = vpop.f32.mrb[5].mxu0 }
 0x136   : > { %v2162_v21 = vmul.f32 -1.442695, %v865_v19  ;;  %v867_v23 = vpop.f32.mrb[5].mxu1  ;;  %2631 = vpow2.f32 %v2159_v17  ;;  %v2161_v24 = vmul.f32 -1.442695, %v610_v22 }
 0x137   : > { %v2163_v25 = vmul.f32 -1.442695, %v867_v23  ;;  %2633 = vpow2.f32 %v2160_v20 }
 0x138   : > { %2635 = vpow2.f32 %v2162_v21  ;;  %v614_v26 = vpop.f32.mrb[6].mxu0 }
 0x139   : > { %v871_v27 = vpop.f32.mrb[6].mxu1  ;;  %v2618_v28 = vpop.eup %2617  ;;  %2637 = vpow2.f32 %v2161_v24  ;;  %v2164_v29 = vmul.f32 -1.442695, %v614_v26 }
 0x13a   : > { %v616_v30 = vpop.f32.mrb[7].mxu0  ;;  %v873_v31 = vpop.f32.mrb[7].mxu1  ;;  %v1428_v33 = vadd.f32 1.0, %v2618_v28  ;;  %2639 = vpow2.f32 %v2163_v25  ;;  %v2166_v1 = vmul.f32 -1.442695, %v871_v27 }
 0x13b   : > { %v2620_v32 = vpop.eup %2619  ;;  %2641 = vpow2.f32 %v2164_v29  ;;  %v2165_v6 = vmul.f32 -1.442695, %v616_v30  ;;  %v2167_v9 = vmul.f32 -1.442695, %v873_v31 }
 0x13c   : > { %v2622_v34 = vpop.eup %2621  ;;  %v1430_v35 = vadd.f32 1.0, %v2620_v32  ;;  %2643 = vrcp.f32 %v1428_v33  ;;  %v620_v37 = vpop.f32.mrb[8].mxu0 }
 0x13d   : > { %v2624_v36 = vpop.eup %2623  ;;  %v1429_v4 = vadd.f32 1.0, %v2622_v34  ;;  %v877_v38 = vpop.f32.mrb[8].mxu1  ;;  %v2168_v11 = vmul.f32 -1.442695, %v620_v37 }
 0x13e   : > { %v2626_v39 = vpop.eup %2625  ;;  %2645 = vrcp.f32 %v1430_v35  ;;  %v1431_v40 = vadd.f32 1.0, %v2624_v36  ;;  %v622_v41 = vpop.f32.mrb[9].mxu0  ;;  %v2170_v15 = vmul.f32 -1.442695, %v877_v38 }
 0x13f   : > { %v2628_v42 = vpop.eup %2627  ;;  %2647 = vrcp.f32 %v1429_v4  ;;  %v1432_v43 = vadd.f32 1.0, %v2626_v39  ;;  %v879_v44 = vpop.f32.mrb[9].mxu1  ;;  %v2169_v19 = vmul.f32 -1.442695, %v622_v41 }
 0x140   : > { %v2630_v45 = vpop.eup %2629  ;;  %2649 = vrcp.f32 %v1431_v40  ;;  %v1434_v46 = vadd.f32 1.0, %v2628_v42  ;;  %v626_v49 = vpop.f32.mrb[10].mxu0  ;;  %v2171_v21 = vmul.f32 -1.442695, %v879_v44 }
 0x141   : > { %v2632_v47 = vpop.eup %2631  ;;  %2651 = vrcp.f32 %v1432_v43  ;;  %v1433_v48 = vadd.f32 1.0, %v2630_v45  ;;  %v883_v50 = vpop.f32.mrb[10].mxu1  ;;  %v2172_v23 = vmul.f32 -1.442695, %v626_v49 }
 0x142   : > { %v2634_v51 = vpop.eup %2633  ;;  %2653 = vrcp.f32 %v1434_v46  ;;  %v1435_v52 = vadd.f32 1.0, %v2632_v47  ;;  %v628_v53 = vpop.f32.mrb[11].mxu0  ;;  %v2174_v27 = vmul.f32 -1.442695, %v883_v50 }
 0x143   : > { %v2636_v54 = vpop.eup %2635  ;;  %2655 = vrcp.f32 %v1433_v48  ;;  %v1436_v55 = vadd.f32 1.0, %v2634_v51  ;;  %v885_v56 = vpop.f32.mrb[11].mxu1  ;;  %v2173_v31 = vmul.f32 -1.442695, %v628_v53 }
 0x144   : > { %v2638_v57 = vpop.eup %2637  ;;  %2657 = vrcp.f32 %v1435_v52  ;;  %v1438_v58 = vadd.f32 1.0, %v2636_v54  ;;  %v632_v61 = vpop.f32.mrb[12].mxu0  ;;  %v2175_v33 = vmul.f32 -1.442695, %v885_v56 }
 0x145   : > { %v2640_v59 = vpop.eup %2639  ;;  %2659 = vrcp.f32 %v1436_v55  ;;  %v1437_v60 = vadd.f32 1.0, %v2638_v57  ;;  %v3696_v62 = vpop.f32.mrb[12].mxu1  ;;  %v2176_v35 = vmul.f32 -1.442695, %v632_v61 }
 0x146   : > { %v2642_v63 = vpop.eup %2641  ;;  %2661 = vrcp.f32 %v1438_v58  ;;  %v1439_v0 = vadd.f32 1.0, %v2640_v59  ;;  %v3698_v2 = vpop.f32.mrb[13].mxu0  ;;  %v2178_v38 = vmul.f32 -1.442695, %v3696_v62 }
 0x147   : > { %v2644_v3 = vpop.eup %2643  ;;  %2663 = vrcp.f32 %v1437_v60  ;;  %v1440_v5 = vadd.f32 1.0, %v2642_v63  ;;  %v3700_v7 = vpop.f32.mrb[13].mxu1 }
 0x148   : > { %v2646_v8 = vpop.eup %2645  ;;  %1812 = vst [vmem:[%s3702_s28] sm:$0xff] %v2644_v3  ;;  %2665 = vrcp.f32 %v1439_v0  ;;  %v3706_v12 = vpop.f32.mrb[14].mxu0 }
 0x149   : > { %v2648_v10 = vpop.eup %2647  ;;  %1814 = vst [vmem:[%s3702_s28 + $0x10] sm:$0xff] %v2646_v8  ;;  %2667 = vrcp.f32 %v1440_v5  ;;  %v3708_v13 = vpop.f32.mrb[14].mxu1 }
 0x14a   : > { %v2650_v14 = vpop.eup %2649  ;;  %1813 = vst [vmem:[%s3702_s28 + $0x8] sm:$0xff] %v2648_v10  ;;  %2669 = vpow2.f32 %v2166_v1  ;;  %v3711_v16 = vpop.f32.mrb[15].mxu0 }
 0x14b   : > { %v3713_v17 = vpop.f32.mrb[15].mxu1  ;;  %v2652_v18 = vpop.eup %2651  ;;  %1815 = vst [vmem:[%s3702_s28 + $0x18] sm:$0xff] %v2650_v14  ;;  %2671 = vpow2.f32 %v2165_v6 }
 0x14c   : > { %v2654_v20 = vpop.eup %2653  ;;  %1816 = vst [vmem:[%s3702_s28 + $0x20] sm:$0xff] %v2652_v18  ;;  %2673 = vpow2.f32 %v2167_v9  ;;  %v3718_v24 = vpop.f32.mrb[16].mxu0 }
 0x14d   : > { %v2656_v22 = vpop.eup %2655  ;;  %1818 = vst [vmem:[%s3702_s28 + $0x30] sm:$0xff] %v2654_v20  ;;  %2675 = vpow2.f32 %v2168_v11  ;;  %v3720_v25 = vpop.f32.mrb[16].mxu1 }
 0x14e   : > { %v2658_v26 = vpop.eup %2657  ;;  %1817 = vst [vmem:[%s3702_s28 + $0x28] sm:$0xff] %v2656_v22  ;;  %2677 = vpow2.f32 %v2170_v15  ;;  %v3723_v28 = vpop.f32.mrb[17].mxu0  ;;  %v2177_v22 = vmul.f32 -1.442695, %v3698_v2 }
 0x14f   : > { %v3725_v29 = vpop.f32.mrb[17].mxu1  ;;  %v2660_v30 = vpop.eup %2659  ;;  %1819 = vst [vmem:[%s3702_s28 + $0x38] sm:$0xff] %v2658_v26  ;;  %2679 = vpow2.f32 %v2169_v19 }
 0x150   : > { %v2662_v32 = vpop.eup %2661  ;;  %1820 = vst [vmem:[%s3702_s28 + $0x40] sm:$0xff] %v2660_v30  ;;  %2681 = vpow2.f32 %v2171_v21  ;;  %v3730_v36 = vpop.f32.mrb[18].mxu0 }
 0x151   : > { %v2664_v34 = vpop.eup %2663  ;;  %1822 = vst [vmem:[%s3702_s28 + $0x50] sm:$0xff] %v2662_v32  ;;  %2683 = vpow2.f32 %v2172_v23  ;;  %v3732_v4 = vpop.f32.mrb[18].mxu1 }
 0x152   : > { %v2666_v37 = vpop.eup %2665  ;;  %1821 = vst [vmem:[%s3702_s28 + $0x48] sm:$0xff] %v2664_v34  ;;  %2685 = vpow2.f32 %v2174_v27  ;;  %v3736_v39 = vpop.f32.mrb[19].mxu0  ;;  %v2179_v27 = vmul.f32 -1.442695, %v3700_v7  ;;  %v2182_v7 = vmul.f32 -1.442695, %v3708_v13 }
 0x153   : > { %v3738_v40 = vpop.f32.mrb[19].mxu1  ;;  %v2668_v41 = vpop.eup %2667  ;;  %1823 = vst [vmem:[%s3702_s28 + $0x58] sm:$0xff] %v2666_v37  ;;  %2687 = vpow2.f32 %v2173_v31  ;;  %v2184_v13 = vmul.f32 -1.442695, %v3718_v24  ;;  %v2187_v24 = vmul.f32 -1.442695, %v3725_v29 }
 0x154   : > { %v2670_v42 = vpop.eup %2669  ;;  %1824 = vst [vmem:[%s3702_s28 + $0x60] sm:$0xff] %v2668_v41  ;;  %2689 = vpow2.f32 %v2175_v33  ;;  %v3742_v45 = vpop.f32.mrb[20].mxu0  ;;  %v2180_v33 = vmul.f32 -1.442695, %v3706_v12  ;;  %v2183_v12 = vmul.f32 -1.442695, %v3713_v17 }
 0x155   : > { %v2672_v43 = vpop.eup %2671  ;;  %v1442_v44 = vadd.f32 1.0, %v2670_v42  ;;  %2691 = vpow2.f32 %v2176_v35  ;;  %v3744_v46 = vpop.f32.mrb[20].mxu1  ;;  %v2186_v17 = vmul.f32 -1.442695, %v3720_v25  ;;  %v2188_v25 = vmul.f32 -1.442695, %v3730_v36 }
 0x156   : > { %v2674_v47 = vpop.eup %2673  ;;  %v1441_v48 = vadd.f32 1.0, %v2672_v43  ;;  %2693 = vpow2.f32 %v2178_v38  ;;  %v3746_v49 = vpop.f32.mrb[21].mxu0  ;;  %v2181_v38 = vmul.f32 -1.442695, %v3711_v16  ;;  %v2190_v29 = vmul.f32 -1.442695, %v3732_v4 }
 0x157   : > { %v2676_v50 = vpop.eup %2675  ;;  %2695 = vrcp.f32 %v1442_v44  ;;  %v1443_v51 = vadd.f32 1.0, %v2674_v47  ;;  %v3748_v52 = vpop.f32.mrb[21].mxu1 }
 0x158   : > { %v2678_v53 = vpop.eup %2677  ;;  %2697 = vrcp.f32 %v1441_v48  ;;  %v1444_v54 = vadd.f32 1.0, %v2676_v50  ;;  %v3750_v57 = vpop.f32.mrb[22].mxu0 }
 0x159   : > { %v2680_v55 = vpop.eup %2679  ;;  %2699 = vrcp.f32 %v1443_v51  ;;  %v1446_v56 = vadd.f32 1.0, %v2678_v53  ;;  %v3752_v58 = vpop.f32.mrb[22].mxu1  ;;  %v2185_v51 = vmul.f32 -1.442695, %v3723_v28 }
 0x15a   : > { %v2682_v59 = vpop.eup %2681  ;;  %2701 = vrcp.f32 %v1444_v54  ;;  %v1445_v60 = vadd.f32 1.0, %v2680_v55  ;;  %v3754_v61 = vpop.f32.mrb[23].mxu0 }
 0x15b   : > { %v2684_v62 = vpop.eup %2683  ;;  %2703 = vrcp.f32 %v1446_v56  ;;  %v1447_v63 = vadd.f32 1.0, %v2682_v59  ;;  %v3756_v0 = vpop.f32.mrb[23].mxu1 }
 0x15c   : > { %v2686_v1 = vpop.eup %2685  ;;  %2705 = vrcp.f32 %v1445_v60  ;;  %v1448_v3 = vadd.f32 1.0, %v2684_v62  ;;  %v3758_v8 = vpop.f32.mrb[24].mxu0 }
 0x15d   : > { %v2688_v5 = vpop.eup %2687  ;;  %2707 = vrcp.f32 %v1447_v63  ;;  %v1450_v6 = vadd.f32 1.0, %v2686_v1  ;;  %v3760_v9 = vpop.f32.mrb[24].mxu1  ;;  %v2189_v63 = vmul.f32 -1.442695, %v3736_v39 }
 0x15e   : > { %v2690_v10 = vpop.eup %2689  ;;  %2709 = vrcp.f32 %v1448_v3  ;;  %v1449_v11 = vadd.f32 1.0, %v2688_v5  ;;  %v3762_v14 = vpop.f32.mrb[25].mxu0 }
 0x15f   : > { %v2692_v15 = vpop.eup %2691  ;;  %2711 = vrcp.f32 %v1450_v6  ;;  %v1451_v18 = vadd.f32 1.0, %v2690_v10  ;;  %v3764_v19 = vpop.f32.mrb[25].mxu1 }
 0x160   : > { %v2694_v20 = vpop.eup %2693  ;;  %2713 = vrcp.f32 %v1449_v11  ;;  %v1452_v21 = vadd.f32 1.0, %v2692_v15  ;;  %v3768_v30 = vpop.f32.mrb[26].mxu0 }
 0x161   : > { %v2696_v23 = vpop.eup %2695  ;;  %2715 = vrcp.f32 %v1451_v18  ;;  %v1454_v26 = vadd.f32 1.0, %v2694_v20  ;;  %v3770_v31 = vpop.f32.mrb[26].mxu1 }
 0x162   : > { %v2698_v32 = vpop.eup %2697  ;;  %1826 = vst [vmem:[%s3702_s28 + $0x70] sm:$0xff] %v2696_v23  ;;  %2717 = vrcp.f32 %v1452_v21  ;;  %v3774_v34 = vpop.f32.mrb[27].mxu0 }
 0x163   : > { %v3776_v35 = vpop.f32.mrb[27].mxu1  ;;  %v2700_v2 = vpop.eup %2699  ;;  %1825 = vst [vmem:[%s3702_s28 + $0x68] sm:$0xff] %v2698_v32  ;;  %2719 = vrcp.f32 %v1454_v26 }
 0x164   : > { %v2702_v37 = vpop.eup %2701  ;;  %1827 = vst [vmem:[%s3702_s28 + $0x78] sm:$0xff] %v2700_v2  ;;  %2721 = vpow2.f32 %v2177_v22  ;;  %v3784_v42 = vpop.f32.mrb[28].mxu0 }
 0x165   : > { %v2704_v41 = vpop.eup %2703  ;;  %1828 = vst [vmem:[%s3702_s28 + $0x80] sm:$0xff] %v2702_v37  ;;  %2723 = vpow2.f32 %v2179_v27  ;;  %v3786_v43 = vpop.f32.mrb[28].mxu1 }
 0x166   : > { %v2706_v44 = vpop.eup %2705  ;;  %1830 = vst [vmem:[%s3702_s28 + $0x90] sm:$0xff] %v2704_v41  ;;  %2725 = vpow2.f32 %v2180_v33  ;;  %v3790_v47 = vpop.f32.mrb[29].mxu0 }
 0x167   : > { %v3792_v48 = vpop.f32.mrb[29].mxu1  ;;  %v2708_v16 = vpop.eup %2707  ;;  %1829 = vst [vmem:[%s3702_s28 + $0x88] sm:$0xff] %v2706_v44  ;;  %2727 = vpow2.f32 %v2182_v7 }
 0x168   : > { %v2710_v50 = vpop.eup %2709  ;;  %1831 = vst [vmem:[%s3702_s28 + $0x98] sm:$0xff] %v2708_v16  ;;  %2729 = vpow2.f32 %v2181_v38  ;;  %v3800_v54 = vpop.f32.mrb[30].mxu0 }
 0x169   : > { %v2712_v53 = vpop.eup %2711  ;;  %1832 = vst [vmem:[%s3702_s28 + $0xa0] sm:$0xff] %v2710_v50  ;;  %2731 = vpow2.f32 %v2183_v12  ;;  %v3802_v55 = vpop.f32.mrb[30].mxu1 }
 0x16a   : > { %v2714_v56 = vpop.eup %2713  ;;  %1834 = vst [vmem:[%s3702_s28 + $0xb0] sm:$0xff] %v2712_v53  ;;  %2733 = vpow2.f32 %v2184_v13  ;;  %v3806_v59 = vpop.f32.mrb[31].mxu0 }
 0x16b   : > { %v3808_v28 = vpop.f32.mrb[31].mxu1  ;;  %v2716_v60 = vpop.eup %2715  ;;  %1833 = vst [vmem:[%s3702_s28 + $0xa8] sm:$0xff] %v2714_v56  ;;  %2735 = vpow2.f32 %v2186_v17 }
 0x16c   : > { %v2718_v62 = vpop.eup %2717  ;;  %1835 = vst [vmem:[%s3702_s28 + $0xb8] sm:$0xff] %v2716_v60  ;;  %2737 = vpow2.f32 %v2185_v51  ;;  %v3815_v3 = vpop.f32.mrb[32].mxu0 }
 0x16d   : > { %v2720_v1 = vpop.eup %2719  ;;  %1836 = vst [vmem:[%s3702_s28 + $0xc0] sm:$0xff] %v2718_v62  ;;  %2739 = vpow2.f32 %v2187_v24  ;;  %v3817_v36 = vpop.f32.mrb[32].mxu1 }
 0x16e   : > { %v2722_v5 = vpop.eup %2721  ;;  %1838 = vst [vmem:[%s3702_s28 + $0xd0] sm:$0xff] %v2720_v1  ;;  %2741 = vpow2.f32 %v2188_v25  ;;  %v3820_v6 = vpop.f32.mrb[33].mxu0 }
 0x16f   : > { %v3822_v10 = vpop.f32.mrb[33].mxu1  ;;  %v2724_v4 = vpop.eup %2723  ;;  %v1453_v11 = vadd.f32 1.0, %v2722_v5  ;;  %2743 = vpow2.f32 %v2190_v29  ;;  %v2191_v5 = vmul.f32 -1.442695, %v3738_v40  ;;  %v2193_v40 = vmul.f32 -1.442695, %v3746_v49 }
 0x170   : > { %v2726_v15 = vpop.eup %2725  ;;  %v1455_v18 = vadd.f32 1.0, %v2724_v4  ;;  %2745 = vpow2.f32 %v2189_v63  ;;  %v3824_v21 = vpop.f32.mrb[34].mxu0  ;;  %v2196_v49 = vmul.f32 -1.442695, %v3750_v57  ;;  %v2199_v57 = vmul.f32 -1.442695, %v3756_v0 }
 0x171   : > { %v2728_v39 = vpop.eup %2727  ;;  %2747 = vrcp.f32 %v1453_v11  ;;  %v1456_v20 = vadd.f32 1.0, %v2726_v15  ;;  %v3826_v22 = vpop.f32.mrb[34].mxu1  ;;  %v2201_v0 = vmul.f32 -1.442695, %v3762_v14 }
 0x172   : > { %v2730_v23 = vpop.eup %2729  ;;  %2749 = vrcp.f32 %v1455_v18  ;;  %v1458_v26 = vadd.f32 1.0, %v2728_v39  ;;  %v3828_v27 = vpop.f32.mrb[35].mxu0  ;;  %v2192_v18 = vmul.f32 -1.442695, %v3742_v45 }
 0x173   : > { %v2732_v32 = vpop.eup %2731  ;;  %2751 = vrcp.f32 %v1456_v20  ;;  %v1457_v33 = vadd.f32 1.0, %v2730_v23  ;;  %v3830_v2 = vpop.f32.mrb[35].mxu1  ;;  %v2194_v23 = vmul.f32 -1.442695, %v3744_v46 }
 0x174   : > { %v2734_v7 = vpop.eup %2733  ;;  %2753 = vrcp.f32 %v1458_v26  ;;  %v1459_v37 = vadd.f32 1.0, %v2732_v32  ;;  %v3832_v12 = vpop.f32.mrb[36].mxu0 }
 0x175   : > { %v2736_v38 = vpop.eup %2735  ;;  %2755 = vrcp.f32 %v1457_v33  ;;  %v1460_v41 = vadd.f32 1.0, %v2734_v7  ;;  %v3834_v44 = vpop.f32.mrb[36].mxu1  ;;  %v2195_v7 = vmul.f32 -1.442695, %v3748_v52  ;;  %v2197_v52 = vmul.f32 -1.442695, %v3754_v61 }
 0x176   : > { %v2738_v13 = vpop.eup %2737  ;;  %2757 = vrcp.f32 %v1459_v37  ;;  %v1462_v16 = vadd.f32 1.0, %v2736_v38  ;;  %v3836_v17 = vpop.f32.mrb[37].mxu0  ;;  %v2200_v61 = vmul.f32 -1.442695, %v3758_v8  ;;  %v2203_v8 = vmul.f32 -1.442695, %v3764_v19 }
 0x177   : > { %v2740_v50 = vpop.eup %2739  ;;  %2759 = vrcp.f32 %v1460_v41  ;;  %v1461_v51 = vadd.f32 1.0, %v2738_v13  ;;  %v3838_v53 = vpop.f32.mrb[37].mxu1  ;;  %v2198_v13 = vmul.f32 -1.442695, %v3752_v58 }
 0x178   : > { %v2742_v24 = vpop.eup %2741  ;;  %2761 = vrcp.f32 %v1462_v16  ;;  %v1463_v56 = vadd.f32 1.0, %v2740_v50  ;;  %v3840_v29 = vpop.f32.mrb[38].mxu0 }
 0x179   : > { %v2744_v25 = vpop.eup %2743  ;;  %2763 = vrcp.f32 %v1461_v51  ;;  %v1464_v60 = vadd.f32 1.0, %v2742_v24  ;;  %v3842_v62 = vpop.f32.mrb[38].mxu1 }
 0x17a   : > { %v2746_v63 = vpop.eup %2745  ;;  %2765 = vrcp.f32 %v1463_v56  ;;  %v1466_v1 = vadd.f32 1.0, %v2744_v25  ;;  %v3845_v4 = vpop.f32.mrb[39].mxu0 }
 0x17b   : > { %v2748_v11 = vpop.eup %2747  ;;  %2767 = vrcp.f32 %v1464_v60  ;;  %v1465_v15 = vadd.f32 1.0, %v2746_v63  ;;  %v3848_v39 = vpop.f32.mrb[39].mxu1  ;;  %v2202_v63 = vmul.f32 -1.442695, %v3760_v9 }
 0x17c   : > { %v2750_v20 = vpop.eup %2749  ;;  %1837 = vst [vmem:[%s3702_s28 + $0xc8] sm:$0xff] %v2748_v11  ;;  %2769 = vrcp.f32 %v1466_v1  ;;  %v3854_v32 = vpop.f32.mrb[40].mxu0 }
 0x17d   : > { %v2752_v26 = vpop.eup %2751  ;;  %1839 = vst [vmem:[%s3702_s28 + $0xd8] sm:$0xff] %v2750_v20  ;;  %2771 = vrcp.f32 %v1465_v15  ;;  %v3856_v33 = vpop.f32.mrb[40].mxu1 }
 0x17e   : > { %v2754_v45 = vpop.eup %2753  ;;  %1840 = vst [vmem:[%s3702_s28 + $0xe0] sm:$0xff] %v2752_v26  ;;  %2773 = vpow2.f32 %v2191_v5  ;;  %v3860_v37 = vpop.f32.mrb[41].mxu0 }
 0x17f   : > { %v3862_v38 = vpop.f32.mrb[41].mxu1  ;;  %v2756_v46 = vpop.eup %2755  ;;  %1842 = vst [vmem:[%s3702_s28 + $0xf0] sm:$0xff] %v2754_v45  ;;  %2775 = vpow2.f32 %v2192_v18 }
 0x180   : > { %v2758_v41 = vpop.eup %2757  ;;  %1841 = vst [vmem:[%s3702_s28 + $0xe8] sm:$0xff] %v2756_v46  ;;  %2777 = vpow2.f32 %v2194_v23  ;;  %v3870_v50 = vpop.f32.mrb[42].mxu0 }
 0x181   : > { %v2760_v16 = vpop.eup %2759  ;;  %1843 = vst [vmem:[%s3702_s28 + $0xf8] sm:$0xff] %v2758_v41  ;;  %2779 = vpow2.f32 %v2193_v40  ;;  %v3872_v51 = vpop.f32.mrb[42].mxu1 }
 0x182   : > { %v2762_v24 = vpop.eup %2761  ;;  %1844 = vst [vmem:[%s3702_s28 + $0x100] sm:$0xff] %v2760_v16  ;;  %2781 = vpow2.f32 %v2195_v7  ;;  %v3876_v56 = vpop.f32.mrb[43].mxu0 }
 0x183   : > { %v3878_v25 = vpop.f32.mrb[43].mxu1  ;;  %v2764_v58 = vpop.eup %2763  ;;  %1846 = vst [vmem:[%s3702_s28 + $0x110] sm:$0xff] %v2762_v24  ;;  %2783 = vpow2.f32 %v2196_v49 }
 0x184   : > { %v2766_v60 = vpop.eup %2765  ;;  %1845 = vst [vmem:[%s3702_s28 + $0x108] sm:$0xff] %v2764_v58  ;;  %2785 = vpow2.f32 %v2198_v13  ;;  %v3886_v5 = vpop.f32.mrb[44].mxu0 }
 0x185   : > { %v2768_v1 = vpop.eup %2767  ;;  %1847 = vst [vmem:[%s3702_s28 + $0x118] sm:$0xff] %v2766_v60  ;;  %2787 = vpow2.f32 %v2197_v52  ;;  %v3888_v11 = vpop.f32.mrb[44].mxu1 }
 0x186   : > { %v2770_v15 = vpop.eup %2769  ;;  %1848 = vst [vmem:[%s3702_s28 + $0x120] sm:$0xff] %v2768_v1  ;;  %2789 = vpow2.f32 %v2199_v57  ;;  %v3892_v18 = vpop.f32.mrb[45].mxu0 }
 0x187   : > { %v3894_v20 = vpop.f32.mrb[45].mxu1  ;;  %v2772_v9 = vpop.eup %2771  ;;  %1850 = vst [vmem:[%s3702_s28 + $0x130] sm:$0xff] %v2770_v15  ;;  %2791 = vpow2.f32 %v2200_v61 }
 0x188   : > { %v2774_v23 = vpop.eup %2773  ;;  %1849 = vst [vmem:[%s3702_s28 + $0x128] sm:$0xff] %v2772_v9  ;;  %2793 = vpow2.f32 %v2202_v63  ;;  %v3898_v40 = vpop.f32.mrb[46].mxu0 }
 0x189   : > { %v2776_v14 = vpop.eup %2775  ;;  %v1467_v26 = vadd.f32 1.0, %v2774_v23  ;;  %2795 = vpow2.f32 %v2201_v0  ;;  %v3900_v45 = vpop.f32.mrb[46].mxu1 }
 0x18a   : > { %v2778_v7 = vpop.eup %2777  ;;  %v1468_v46 = vadd.f32 1.0, %v2776_v14  ;;  %2797 = vpow2.f32 %v2203_v8  ;;  %v3902_v19 = vpop.f32.mrb[47].mxu0 }
 0x18b   : > { %v2780_v49 = vpop.eup %2779  ;;  %2799 = vrcp.f32 %v1467_v26  ;;  %v1470_v41 = vadd.f32 1.0, %v2778_v7  ;;  %v3904_v13 = vpop.f32.mrb[47].mxu1 }
 0x18c   : > { %v2782_v16 = vpop.eup %2781  ;;  %2801 = vrcp.f32 %v1468_v46  ;;  %v1469_v52 = vadd.f32 1.0, %v2780_v49  ;;  %v3906_v58 = vpop.f32.mrb[48].mxu0 }
 0x18d   : > { %v2784_v24 = vpop.eup %2783  ;;  %2803 = vrcp.f32 %v1470_v41  ;;  %v1471_v57 = vadd.f32 1.0, %v2782_v16  ;;  %v3908_v61 = vpop.f32.mrb[48].mxu1 }
 0x18e   : > { %v2786_v60 = vpop.eup %2785  ;;  %2805 = vrcp.f32 %v1469_v52  ;;  %v1472_v63 = vadd.f32 1.0, %v2784_v24  ;;  %v3910_v1 = vpop.f32.mrb[49].mxu0 }
 0x18f   : > { %v2788_v0 = vpop.eup %2787  ;;  %2807 = vrcp.f32 %v1471_v57  ;;  %v1474_v15 = vadd.f32 1.0, %v2786_v60  ;;  %v3912_v8 = vpop.f32.mrb[49].mxu1 }
 0x190   : > { %v2790_v9 = vpop.eup %2789  ;;  %2809 = vrcp.f32 %v1472_v63  ;;  %v1473_v23 = vadd.f32 1.0, %v2788_v0  ;;  %v3914_v7 = vpop.f32.mrb[50].mxu0  ;;  %v2204_v0 = vmul.f32 -1.442695, %v3768_v30 }
 0x191   : > { %v2792_v14 = vpop.eup %2791  ;;  %2811 = vrcp.f32 %v1474_v15  ;;  %v1475_v26 = vadd.f32 1.0, %v2790_v9  ;;  %v3916_v46 = vpop.f32.mrb[50].mxu1 }
 0x192   : > { %v2794_v49 = vpop.eup %2793  ;;  %2813 = vrcp.f32 %v1473_v23  ;;  %v1476_v41 = vadd.f32 1.0, %v2792_v14  ;;  %v3918_v16 = vpop.f32.mrb[51].mxu0  ;;  %v2206_v23 = vmul.f32 -1.442695, %v3770_v31  ;;  %v2207_v31 = vmul.f32 -1.442695, %v3776_v35 }
 0x193   : > { %4194 = vst [vmem:[#allocation5_spill] sm:$0xff] %v3918_v16  ;;  %v2796_v52 = vpop.eup %2795  ;;  %2815 = vrcp.f32 %v1475_v26  ;;  %v1478_v24 = vadd.f32 1.0, %v2794_v49  ;;  %v3920_v57 = vpop.f32.mrb[51].mxu1  ;;  %v2205_v49 = vmul.f32 -1.442695, %v3774_v34 }
 0x194   : > { %v2798_v60 = vpop.eup %2797  ;;  %2817 = vrcp.f32 %v1476_v41  ;;  %v1477_v63 = vadd.f32 1.0, %v2796_v52  ;;  %v3924_v14 = vpop.f32.mrb[52].mxu0  ;;  %v2210_v34 = vmul.f32 -1.442695, %v3786_v43  ;;  %v2209_v35 = vmul.f32 -1.442695, %v3790_v47 }
 0x195   : > { %v2800_v15 = vpop.eup %2799  ;;  %2819 = vrcp.f32 %v1478_v24  ;;  %v1479_v9 = vadd.f32 1.0, %v2798_v60  ;;  %v3926_v16 = vpop.f32.mrb[52].mxu1  ;;  %v2208_v60 = vmul.f32 -1.442695, %v3784_v42  ;;  %v2211_v43 = vmul.f32 -1.442695, %v3792_v48 }
 0x196   : > { %v2802_v26 = vpop.eup %2801  ;;  %1851 = vst [vmem:[%s3702_s28 + $0x138] sm:$0xff] %v2800_v15  ;;  %2821 = vrcp.f32 %v1477_v63  ;;  %v3930_v41 = vpop.f32.mrb[53].mxu0  ;;  %v2214_v47 = vmul.f32 -1.442695, %v3802_v55  ;;  %v2213_v48 = vmul.f32 -1.442695, %v3806_v59 }
 0x197   : > { %v3932_v52 = vpop.f32.mrb[53].mxu1  ;;  %v2804_v30 = vpop.eup %2803  ;;  %1852 = vst [vmem:[%s3702_s28 + $0x140] sm:$0xff] %v2802_v26  ;;  %2823 = vrcp.f32 %v1479_v9  ;;  %v2215_v55 = vmul.f32 -1.442695, %v3808_v28 }
 0x198   : > { %4195 = vst [vmem:[#allocation6_spill] sm:$0xff] %v3932_v52  ;;  %v2806_v24 = vpop.eup %2805  ;;  %1854 = vst [vmem:[%s3702_s28 + $0x150] sm:$0xff] %v2804_v30  ;;  %2825 = vpow2.f32 %v2204_v0  ;;  %v3940_v63 = vpop.f32.mrb[54].mxu0  ;;  %v2212_v30 = vmul.f32 -1.442695, %v3800_v54 }
 0x199   : > { %v2808_v15 = vpop.eup %2807  ;;  %1853 = vst [vmem:[%s3702_s28 + $0x148] sm:$0xff] %v2806_v24  ;;  %2827 = vpow2.f32 %v2206_v23  ;;  %v3942_v52 = vpop.f32.mrb[54].mxu1 }
 0x19a   : > { %v2810_v9 = vpop.eup %2809  ;;  %1855 = vst [vmem:[%s3702_s28 + $0x158] sm:$0xff] %v2808_v15  ;;  %2829 = vpow2.f32 %v2205_v49  ;;  %v3946_v26 = vpop.f32.mrb[55].mxu0 }
 0x19b   : > { %v3948_v0 = vpop.f32.mrb[55].mxu1  ;;  %v2812_v42 = vpop.eup %2811  ;;  %1856 = vst [vmem:[%s3702_s28 + $0x160] sm:$0xff] %v2810_v9  ;;  %2831 = vpow2.f32 %v2207_v31 }
 0x19c   : > { %v2814_v23 = vpop.eup %2813  ;;  %1858 = vst [vmem:[%s3702_s28 + $0x170] sm:$0xff] %v2812_v42  ;;  %2833 = vpow2.f32 %v2208_v60  ;;  %v3956_v49 = vpop.f32.mrb[56].mxu0  ;;  %v2216_v42 = vmul.f32 -1.442695, %v3815_v3 }
 0x19d   : > { %v2816_v24 = vpop.eup %2815  ;;  %1857 = vst [vmem:[%s3702_s28 + $0x168] sm:$0xff] %v2814_v23  ;;  %2835 = vpow2.f32 %v2210_v34  ;;  %v3958_v15 = vpop.f32.mrb[56].mxu1 }
 0x19e   : > { %v2818_v31 = vpop.eup %2817  ;;  %1859 = vst [vmem:[%s3702_s28 + $0x178] sm:$0xff] %v2816_v24  ;;  %2837 = vpow2.f32 %v2209_v35  ;;  %v3962_v9 = vpop.f32.mrb[57].mxu0 }
 0x19f   : > { %v3964_v54 = vpop.f32.mrb[57].mxu1  ;;  %v2820_v60 = vpop.eup %2819  ;;  %1860 = vst [vmem:[%s3702_s28 + $0x180] sm:$0xff] %v2818_v31  ;;  %2839 = vpow2.f32 %v2211_v43 }
 0x1a0   : > { %4196 = vst [vmem:[#allocation7_spill] sm:$0xff] %v3964_v54  ;;  %v2822_v34 = vpop.eup %2821  ;;  %1862 = vst [vmem:[%s3702_s28 + $0x190] sm:$0xff] %v2820_v60  ;;  %2841 = vpow2.f32 %v2212_v30  ;;  %v3971_v35 = vpop.f32.mrb[58].mxu0 }
 0x1a1   : > { %v2824_v23 = vpop.eup %2823  ;;  %1861 = vst [vmem:[%s3702_s28 + $0x188] sm:$0xff] %v2822_v34  ;;  %2843 = vpow2.f32 %v2214_v47  ;;  %4197 = vst [vmem:[#allocation8_spill] sm:$0xff] %v3971_v35  ;;  %v3973_v59 = vpop.f32.mrb[58].mxu1 }
 0x1a2   : > { %4198 = vst [vmem:[#allocation9_spill] sm:$0xff] %v3973_v59  ;;  %v2826_v24 = vpop.eup %2825  ;;  %1863 = vst [vmem:[%s3702_s28 + $0x198] sm:$0xff] %v2824_v23  ;;  %2845 = vpow2.f32 %v2213_v48  ;;  %v3976_v54 = vpop.f32.mrb[59].mxu0 }
 0x1a3   : > { %4199 = vst [vmem:[#allocation10_spill] sm:$0xff] %v3976_v54  ;;  %v3978_v43 = vpop.f32.mrb[59].mxu1  ;;  %v2828_v28 = vpop.eup %2827  ;;  %v1480_v31 = vadd.f32 1.0, %v2826_v24  ;;  %2847 = vpow2.f32 %v2215_v55 }
 0x1a4   : > { %4200 = vst [vmem:[#allocation11_spill] sm:$0xff] %v3978_v43  ;;  %v2830_v30 = vpop.eup %2829  ;;  %v1482_v60 = vadd.f32 1.0, %v2828_v28  ;;  %2849 = vpow2.f32 %v2216_v42  ;;  %v3980_v34 = vpop.f32.mrb[60].mxu0 }
 0x1a5   : > { %v2832_v3 = vpop.eup %2831  ;;  %2851 = vrcp.f32 %v1480_v31  ;;  %v1481_v47 = vadd.f32 1.0, %v2830_v30  ;;  %4201 = vst [vmem:[#allocation12_spill] sm:$0xff] %v3980_v34  ;;  %v3982_v35 = vpop.f32.mrb[60].mxu1 }
 0x1a6   : > { %4202 = vst [vmem:[#allocation13_spill] sm:$0xff] %v3982_v35  ;;  %v2834_v59 = vpop.eup %2833  ;;  %2853 = vrcp.f32 %v1482_v60  ;;  %v1483_v48 = vadd.f32 1.0, %v2832_v3  ;;  %v3984_v23 = vpop.f32.mrb[61].mxu0 }
 0x1a7   : > { %4203 = vst [vmem:[#allocation14_spill] sm:$0xff] %v3984_v23  ;;  %v2836_v54 = vpop.eup %2835  ;;  %2855 = vrcp.f32 %v1481_v47  ;;  %v1484_v43 = vadd.f32 1.0, %v2834_v59  ;;  %v3986_v24 = vpop.f32.mrb[61].mxu1 }
 0x1a8   : > { %v2838_v55 = vpop.eup %2837  ;;  %2857 = vrcp.f32 %v1483_v48  ;;  %v1486_v42 = vadd.f32 1.0, %v2836_v54  ;;  %v3988_v30 = vpop.f32.mrb[62].mxu0 }
 0x1a9   : > { %v2840_v28 = vpop.eup %2839  ;;  %2859 = vrcp.f32 %v1484_v43  ;;  %v1485_v31 = vadd.f32 1.0, %v2838_v55  ;;  %4204 = vst [vmem:[#allocation15_spill] sm:$0xff] %v3988_v30  ;;  %v3990_v34 = vpop.f32.mrb[62].mxu1 }
 0x1aa   : > { %v2842_v35 = vpop.eup %2841  ;;  %2861 = vrcp.f32 %v1486_v42  ;;  %v1487_v60 = vadd.f32 1.0, %v2840_v28  ;;  %v3992_v3 = vpop.f32.mrb[63].mxu0  ;;  %v2218_v28 = vmul.f32 -1.442695, %v3817_v36  ;;  %v2222_v36 = vmul.f32 -1.442695, %v3826_v22 }
 0x1ab   : > { %4205 = vst [vmem:[#allocation16_spill] sm:$0xff] %v3992_v3  ;;  %v2844_v23 = vpop.eup %2843  ;;  %2863 = vrcp.f32 %v1485_v31  ;;  %v1488_v59 = vadd.f32 1.0, %v2842_v35  ;;  %v3994_v47 = vpop.f32.mrb[63].mxu1  ;;  %v2217_v31 = vmul.f32 -1.442695, %v3820_v6 }
 0x1ac   : > { %4206 = vst [vmem:[#allocation17_spill] sm:$0xff] %v3994_v47  ;;  %v2846_v48 = vpop.eup %2845  ;;  %2865 = vrcp.f32 %v1487_v60  ;;  %v1490_v54 = vadd.f32 1.0, %v2844_v23  ;;  %v2219_v23 = vmul.f32 -1.442695, %v3822_v10  ;;  %v2221_v6 = vmul.f32 -1.442695, %v3828_v27 }
 0x1ad   : > { %v2848_v43 = vpop.eup %2847  ;;  %2867 = vrcp.f32 %v1488_v59  ;;  %v1489_v55 = vadd.f32 1.0, %v2846_v48  ;;  %v2220_v59 = vmul.f32 -1.442695, %v3824_v21  ;;  %v2223_v10 = vmul.f32 -1.442695, %v3830_v2 }
 0x1ae   : > { %v2850_v30 = vpop.eup %2849  ;;  %2869 = vrcp.f32 %v1490_v54  ;;  %v1491_v42 = vadd.f32 1.0, %v2848_v43  ;;  %v2224_v21 = vmul.f32 -1.442695, %v3832_v12  ;;  %v2226_v22 = vmul.f32 -1.442695, %v3834_v44 }
 0x1af   : > { %v2852_v3 = vpop.eup %2851  ;;  %2871 = vrcp.f32 %v1489_v55  ;;  %v1492_v35 = vadd.f32 1.0, %v2850_v30  ;;  %v2225_v27 = vmul.f32 -1.442695, %v3836_v17  ;;  %v2227_v2 = vmul.f32 -1.442695, %v3838_v53 }
 0x1b0   : > { %v2854_v47 = vpop.eup %2853  ;;  %1864 = vst [vmem:[%s3702_s28 + $0x1a0] sm:$0xff] %v2852_v3  ;;  %2873 = vrcp.f32 %v1491_v42  ;;  %v2228_v12 = vmul.f32 -1.442695, %v3840_v29  ;;  %v2230_v44 = vmul.f32 -1.442695, %v3842_v62 }
 0x1b1   : > { %v2856_v60 = vpop.eup %2855  ;;  %1866 = vst [vmem:[%s3702_s28 + $0x1b0] sm:$0xff] %v2854_v47  ;;  %2875 = vrcp.f32 %v1492_v35 }
 0x1b2   : > { %v2858_v48 = vpop.eup %2857  ;;  %1865 = vst [vmem:[%s3702_s28 + $0x1a8] sm:$0xff] %v2856_v60  ;;  %2877 = vpow2.f32 %v2218_v28 }
 0x1b3   : > { %v2860_v30 = vpop.eup %2859  ;;  %1867 = vst [vmem:[%s3702_s28 + $0x1b8] sm:$0xff] %v2858_v48  ;;  %2879 = vpow2.f32 %v2217_v31 }
 0x1b4   : > { %v2862_v3 = vpop.eup %2861  ;;  %1868 = vst [vmem:[%s3702_s28 + $0x1c0] sm:$0xff] %v2860_v30  ;;  %2881 = vpow2.f32 %v2219_v23 }
 0x1b5   : > { %v2864_v47 = vpop.eup %2863  ;;  %1870 = vst [vmem:[%s3702_s28 + $0x1d0] sm:$0xff] %v2862_v3  ;;  %2883 = vpow2.f32 %v2220_v59 }
 0x1b6   : > { %v2866_v54 = vpop.eup %2865  ;;  %1869 = vst [vmem:[%s3702_s28 + $0x1c8] sm:$0xff] %v2864_v47  ;;  %2885 = vpow2.f32 %v2222_v36 }
 0x1b7   : > { %v2868_v43 = vpop.eup %2867  ;;  %1871 = vst [vmem:[%s3702_s28 + $0x1d8] sm:$0xff] %v2866_v54  ;;  %2887 = vpow2.f32 %v2221_v6 }
 0x1b8   : > { %v2870_v55 = vpop.eup %2869  ;;  %1872 = vst [vmem:[%s3702_s28 + $0x1e0] sm:$0xff] %v2868_v43  ;;  %2889 = vpow2.f32 %v2223_v10 }
 0x1b9   : > { %v2872_v42 = vpop.eup %2871  ;;  %1874 = vst [vmem:[%s3702_s28 + $0x1f0] sm:$0xff] %v2870_v55  ;;  %2891 = vpow2.f32 %v2224_v21 }
 0x1ba   : > { %v2874_v28 = vpop.eup %2873  ;;  %1873 = vst [vmem:[%s3702_s28 + $0x1e8] sm:$0xff] %v2872_v42  ;;  %2893 = vpow2.f32 %v2226_v22 }
 0x1bb   : > { %v2876_v35 = vpop.eup %2875  ;;  %1875 = vst [vmem:[%s3702_s28 + $0x1f8] sm:$0xff] %v2874_v28  ;;  %2895 = vpow2.f32 %v2225_v27 }
 0x1bc   : > { %v2878_v17 = vpop.eup %2877  ;;  %1876 = vst [vmem:[%s3702_s28 + $0x200] sm:$0xff] %v2876_v35  ;;  %2897 = vpow2.f32 %v2227_v2 }
 0x1bd   : > { %v2880_v31 = vpop.eup %2879  ;;  %v1494_v23 = vadd.f32 1.0, %v2878_v17  ;;  %2899 = vpow2.f32 %v2228_v12 }
 0x1be   : > { %v2882_v53 = vpop.eup %2881  ;;  %v1493_v60 = vadd.f32 1.0, %v2880_v31  ;;  %2901 = vpow2.f32 %v2230_v44  ;;  %v2229_v44 = vmul.f32 -1.442695, %v3845_v4  ;;  %v2231_v31 = vmul.f32 -1.442695, %v3848_v39 }
 0x1bf   : > { %v2884_v59 = vpop.eup %2883  ;;  %2903 = vrcp.f32 %v1494_v23  ;;  %v1495_v29 = vadd.f32 1.0, %v2882_v53  ;;  %v2232_v53 = vmul.f32 -1.442695, %v3854_v32  ;;  %v2233_v4 = vmul.f32 -1.442695, %v3860_v37 }
 0x1c0   : > { %v2886_v48 = vpop.eup %2885  ;;  %2905 = vrcp.f32 %v1493_v60  ;;  %v1496_v36 = vadd.f32 1.0, %v2884_v59  ;;  %v2234_v59 = vmul.f32 -1.442695, %v3856_v33  ;;  %v2235_v39 = vmul.f32 -1.442695, %v3862_v38 }
 0x1c1   : > { %v2888_v30 = vpop.eup %2887  ;;  %2907 = vrcp.f32 %v1495_v29  ;;  %v1498_v62 = vadd.f32 1.0, %v2886_v48  ;;  %v2236_v32 = vmul.f32 -1.442695, %v3870_v50  ;;  %v2238_v33 = vmul.f32 -1.442695, %v3872_v51 }
 0x1c2   : > { %v2890_v6 = vpop.eup %2889  ;;  %2909 = vrcp.f32 %v1496_v36  ;;  %v1497_v3 = vadd.f32 1.0, %v2888_v30  ;;  %v2237_v37 = vmul.f32 -1.442695, %v3876_v56  ;;  %v2239_v38 = vmul.f32 -1.442695, %v3878_v25 }
 0x1c3   : > { %v2892_v10 = vpop.eup %2891  ;;  %2911 = vrcp.f32 %v1498_v62  ;;  %v1499_v47 = vadd.f32 1.0, %v2890_v6  ;;  %v2240_v50 = vmul.f32 -1.442695, %v3886_v5  ;;  %v2242_v51 = vmul.f32 -1.442695, %v3888_v11 }
 0x1c4   : > { %v2894_v21 = vpop.eup %2893  ;;  %2913 = vrcp.f32 %v1497_v3  ;;  %v1500_v54 = vadd.f32 1.0, %v2892_v10  ;;  %v2241_v56 = vmul.f32 -1.442695, %v3892_v18 }
 0x1c5   : > { %v2896_v22 = vpop.eup %2895  ;;  %2915 = vrcp.f32 %v1499_v47  ;;  %v1502_v43 = vadd.f32 1.0, %v2894_v21 }
 0x1c6   : > { %v2898_v27 = vpop.eup %2897  ;;  %2917 = vrcp.f32 %v1500_v54  ;;  %v1501_v55 = vadd.f32 1.0, %v2896_v22 }
 0x1c7   : > { %v2900_v2 = vpop.eup %2899  ;;  %2919 = vrcp.f32 %v1502_v43  ;;  %v1503_v42 = vadd.f32 1.0, %v2898_v27 }
 0x1c8   : > { %v2902_v12 = vpop.eup %2901  ;;  %2921 = vrcp.f32 %v1501_v55  ;;  %v1504_v28 = vadd.f32 1.0, %v2900_v2 }
 0x1c9   : > { %v2904_v35 = vpop.eup %2903  ;;  %2923 = vrcp.f32 %v1503_v42  ;;  %v1506_v17 = vadd.f32 1.0, %v2902_v12 }
 0x1ca   : > { %v2906_v23 = vpop.eup %2905  ;;  %1878 = vst [vmem:[%s3702_s28 + $0x210] sm:$0xff] %v2904_v35  ;;  %2925 = vrcp.f32 %v1504_v28 }
 0x1cb   : > { %v2908_v60 = vpop.eup %2907  ;;  %1877 = vst [vmem:[%s3702_s28 + $0x208] sm:$0xff] %v2906_v23  ;;  %2927 = vrcp.f32 %v1506_v17 }
 0x1cc   : > { %v2910_v29 = vpop.eup %2909  ;;  %1879 = vst [vmem:[%s3702_s28 + $0x218] sm:$0xff] %v2908_v60  ;;  %2929 = vpow2.f32 %v2229_v44 }
 0x1cd   : > { %v2912_v48 = vpop.eup %2911  ;;  %1880 = vst [vmem:[%s3702_s28 + $0x220] sm:$0xff] %v2910_v29  ;;  %2931 = vpow2.f32 %v2231_v31 }
 0x1ce   : > { %v2914_v36 = vpop.eup %2913  ;;  %1882 = vst [vmem:[%s3702_s28 + $0x230] sm:$0xff] %v2912_v48  ;;  %2933 = vpow2.f32 %v2232_v53 }
 0x1cf   : > { %v2916_v30 = vpop.eup %2915  ;;  %1881 = vst [vmem:[%s3702_s28 + $0x228] sm:$0xff] %v2914_v36  ;;  %2935 = vpow2.f32 %v2234_v59  ;;  %v2243_v36 = vmul.f32 -1.442695, %v3894_v20  ;;  %v2247_v20 = vmul.f32 -1.442695, %v3904_v13 }
 0x1d0   : > { %v2918_v62 = vpop.eup %2917  ;;  %1883 = vst [vmem:[%s3702_s28 + $0x238] sm:$0xff] %v2916_v30  ;;  %2937 = vpow2.f32 %v2233_v4  ;;  %v2251_v13 = vmul.f32 -1.442695, %v3912_v8  ;;  %v2255_v8 = vmul.f32 -1.442695, %v3920_v57 }
 0x1d1   : > { %v2920_v6 = vpop.eup %2919  ;;  %1884 = vst [vmem:[%s3702_s28 + $0x240] sm:$0xff] %v2918_v62  ;;  %2939 = vpow2.f32 %v2235_v39 }
 0x1d2   : > { %v2922_v3 = vpop.eup %2921  ;;  %1886 = vst [vmem:[%s3702_s28 + $0x250] sm:$0xff] %v2920_v6  ;;  %2941 = vpow2.f32 %v2236_v32 }
 0x1d3   : > { %v2924_v10 = vpop.eup %2923  ;;  %1885 = vst [vmem:[%s3702_s28 + $0x248] sm:$0xff] %v2922_v3  ;;  %2943 = vpow2.f32 %v2238_v33  ;;  %v2244_v33 = vmul.f32 -1.442695, %v3898_v40  ;;  %v2248_v40 = vmul.f32 -1.442695, %v3906_v58 }
 0x1d4   : > { %v2926_v47 = vpop.eup %2925  ;;  %1887 = vst [vmem:[%s3702_s28 + $0x258] sm:$0xff] %v2924_v10  ;;  %2945 = vpow2.f32 %v2237_v37  ;;  %v2246_v37 = vmul.f32 -1.442695, %v3900_v45  ;;  %v2250_v45 = vmul.f32 -1.442695, %v3908_v61 }
 0x1d5   : > { %v2928_v21 = vpop.eup %2927  ;;  %1888 = vst [vmem:[%s3702_s28 + $0x260] sm:$0xff] %v2926_v47  ;;  %2947 = vpow2.f32 %v2239_v38  ;;  %v2245_v38 = vmul.f32 -1.442695, %v3902_v19  ;;  %v2249_v19 = vmul.f32 -1.442695, %v3910_v1  ;;  %v4207_v1 = vld [vmem:[#allocation5_spill] sm:$0xff] }
 0x1d6   : > { %v2930_v25 = vpop.eup %2929  ;;  %1890 = vst [vmem:[%s3702_s28 + $0x270] sm:$0xff] %v2928_v21  ;;  %2949 = vpow2.f32 %v2240_v50  ;;  %v2252_v58 = vmul.f32 -1.442695, %v3914_v7  ;;  %v2254_v61 = vmul.f32 -1.442695, %v3916_v46 }
 0x1d7   : > { %v2932_v54 = vpop.eup %2931  ;;  %v1505_v22 = vadd.f32 1.0, %v2930_v25  ;;  %2951 = vpow2.f32 %v2242_v51 }
 0x1d8   : > { %v2934_v5 = vpop.eup %2933  ;;  %v1507_v43 = vadd.f32 1.0, %v2932_v54  ;;  %2953 = vpow2.f32 %v2241_v56  ;;  %v2253_v54 = vmul.f32 -1.442695, %v4207_v1 }
 0x1d9   : > { %v2936_v27 = vpop.eup %2935  ;;  %2955 = vrcp.f32 %v1505_v22  ;;  %v1508_v11 = vadd.f32 1.0, %v2934_v5 }
 0x1da   : > { %v2938_v55 = vpop.eup %2937  ;;  %2957 = vrcp.f32 %v1507_v43  ;;  %v1510_v2 = vadd.f32 1.0, %v2936_v27 }
 0x1db   : > { %v2940_v42 = vpop.eup %2939  ;;  %2959 = vrcp.f32 %v1508_v11  ;;  %v1509_v18 = vadd.f32 1.0, %v2938_v55 }
 0x1dc   : > { %v2942_v12 = vpop.eup %2941  ;;  %2961 = vrcp.f32 %v1510_v2  ;;  %v1511_v28 = vadd.f32 1.0, %v2940_v42 }
 0x1dd   : > { %v2944_v44 = vpop.eup %2943  ;;  %2963 = vrcp.f32 %v1509_v18  ;;  %v1512_v35 = vadd.f32 1.0, %v2942_v12 }
 0x1de   : > { %v2946_v17 = vpop.eup %2945  ;;  %2965 = vrcp.f32 %v1511_v28  ;;  %v1514_v31 = vadd.f32 1.0, %v2944_v44 }
 0x1df   : > { %v2948_v23 = vpop.eup %2947  ;;  %2967 = vrcp.f32 %v1512_v35  ;;  %v1513_v53 = vadd.f32 1.0, %v2946_v17 }
 0x1e0   : > { %v2950_v60 = vpop.eup %2949  ;;  %2969 = vrcp.f32 %v1514_v31  ;;  %v1515_v59 = vadd.f32 1.0, %v2948_v23 }
 0x1e1   : > { %v2952_v29 = vpop.eup %2951  ;;  %2971 = vrcp.f32 %v1513_v53  ;;  %v1516_v4 = vadd.f32 1.0, %v2950_v60 }
 0x1e2   : > { %v2954_v48 = vpop.eup %2953  ;;  %2973 = vrcp.f32 %v1515_v59  ;;  %v1518_v39 = vadd.f32 1.0, %v2952_v29 }
 0x1e3   : > { %v2956_v32 = vpop.eup %2955  ;;  %2975 = vrcp.f32 %v1516_v4  ;;  %v1517_v30 = vadd.f32 1.0, %v2954_v48 }
 0x1e4   : > { %v2958_v62 = vpop.eup %2957  ;;  %1889 = vst [vmem:[%s3702_s28 + $0x268] sm:$0xff] %v2956_v32  ;;  %2977 = vrcp.f32 %v1518_v39  ;;  %v2256_v32 = vmul.f32 -1.442695, %v3924_v14  ;;  %v2260_v14 = vmul.f32 -1.442695, %v3940_v63 }
 0x1e5   : > { %v2960_v6 = vpop.eup %2959  ;;  %1891 = vst [vmem:[%s3702_s28 + $0x278] sm:$0xff] %v2958_v62  ;;  %2979 = vrcp.f32 %v1517_v30  ;;  %v2258_v62 = vmul.f32 -1.442695, %v3926_v16  ;;  %v2262_v16 = vmul.f32 -1.442695, %v3942_v52 }
 0x1e6   : > { %v2962_v3 = vpop.eup %2961  ;;  %1892 = vst [vmem:[%s3702_s28 + $0x280] sm:$0xff] %v2960_v6  ;;  %2981 = vpow2.f32 %v2243_v36  ;;  %v2257_v6 = vmul.f32 -1.442695, %v3930_v41  ;;  %v2261_v41 = vmul.f32 -1.442695, %v3946_v26 }
 0x1e7   : > { %v2964_v50 = vpop.eup %2963  ;;  %1894 = vst [vmem:[%s3702_s28 + $0x290] sm:$0xff] %v2962_v3  ;;  %2983 = vpow2.f32 %v2244_v33  ;;  %v4208_v3 = vld [vmem:[#allocation6_spill] sm:$0xff]  ;;  %v2264_v63 = vmul.f32 -1.442695, %v3956_v49  ;;  %v2266_v52 = vmul.f32 -1.442695, %v3958_v15 }
 0x1e8   : > { %v2966_v10 = vpop.eup %2965  ;;  %1893 = vst [vmem:[%s3702_s28 + $0x288] sm:$0xff] %v2964_v50  ;;  %2985 = vpow2.f32 %v2246_v37  ;;  %v2265_v26 = vmul.f32 -1.442695, %v3962_v9  ;;  %v4210_v49 = vld [vmem:[#allocation8_spill] sm:$0xff] }
 0x1e9   : > { %v2968_v51 = vpop.eup %2967  ;;  %1895 = vst [vmem:[%s3702_s28 + $0x298] sm:$0xff] %v2966_v10  ;;  %2987 = vpow2.f32 %v2245_v38 }
 0x1ea   : > { %v2970_v47 = vpop.eup %2969  ;;  %1896 = vst [vmem:[%s3702_s28 + $0x2a0] sm:$0xff] %v2968_v51  ;;  %2989 = vpow2.f32 %v2247_v20  ;;  %v2259_v20 = vmul.f32 -1.442695, %v4208_v3  ;;  %v2263_v51 = vmul.f32 -1.442695, %v3948_v0  ;;  %v4209_v0 = vld [vmem:[#allocation7_spill] sm:$0xff] }
 0x1eb   : > { %v2972_v56 = vpop.eup %2971  ;;  %1898 = vst [vmem:[%s3702_s28 + $0x2b0] sm:$0xff] %v2970_v47  ;;  %2991 = vpow2.f32 %v2248_v40 }
 0x1ec   : > { %v2974_v21 = vpop.eup %2973  ;;  %1897 = vst [vmem:[%s3702_s28 + $0x2a8] sm:$0xff] %v2972_v56  ;;  %2993 = vpow2.f32 %v2250_v45 }
 0x1ed   : > { %v2976_v25 = vpop.eup %2975  ;;  %1899 = vst [vmem:[%s3702_s28 + $0x2b8] sm:$0xff] %v2974_v21  ;;  %2995 = vpow2.f32 %v2249_v19 }
 0x1ee   : > { %v2978_v22 = vpop.eup %2977  ;;  %1900 = vst [vmem:[%s3702_s28 + $0x2c0] sm:$0xff] %v2976_v25  ;;  %2997 = vpow2.f32 %v2251_v13 }
 0x1ef   : > { %v2980_v5 = vpop.eup %2979  ;;  %1902 = vst [vmem:[%s3702_s28 + $0x2d0] sm:$0xff] %v2978_v22  ;;  %2999 = vpow2.f32 %v2252_v58  ;;  %v2267_v58 = vmul.f32 -1.442695, %v4209_v0 }
 0x1f0   : > { %v2982_v7 = vpop.eup %2981  ;;  %1901 = vst [vmem:[%s3702_s28 + $0x2c8] sm:$0xff] %v2980_v5  ;;  %3001 = vpow2.f32 %v2254_v61  ;;  %v2268_v61 = vmul.f32 -1.442695, %v4210_v49 }
 0x1f1   : > { %v2984_v43 = vpop.eup %2983  ;;  %v1519_v27 = vadd.f32 1.0, %v2982_v7  ;;  %3003 = vpow2.f32 %v2253_v54 }
 0x1f2   : > { %v2986_v46 = vpop.eup %2985  ;;  %v1520_v11 = vadd.f32 1.0, %v2984_v43  ;;  %3005 = vpow2.f32 %v2255_v8 }
 0x1f3   : > { %v2988_v55 = vpop.eup %2987  ;;  %3007 = vrcp.f32 %v1519_v27  ;;  %v1522_v2 = vadd.f32 1.0, %v2986_v46 }
 0x1f4   : > { %v2990_v42 = vpop.eup %2989  ;;  %3009 = vrcp.f32 %v1520_v11  ;;  %v1521_v18 = vadd.f32 1.0, %v2988_v55 }
 0x1f5   : > { %v2992_v12 = vpop.eup %2991  ;;  %3011 = vrcp.f32 %v1522_v2  ;;  %v1523_v57 = vadd.f32 1.0, %v2990_v42 }
 0x1f6   : > { %v2994_v28 = vpop.eup %2993  ;;  %3013 = vrcp.f32 %v1521_v18  ;;  %v1524_v44 = vadd.f32 1.0, %v2992_v12 }
 0x1f7   : > { %v2996_v35 = vpop.eup %2995  ;;  %3015 = vrcp.f32 %v1523_v57  ;;  %v1526_v17 = vadd.f32 1.0, %v2994_v28 }
 0x1f8   : > { %v2998_v31 = vpop.eup %2997  ;;  %3017 = vrcp.f32 %v1524_v44  ;;  %v1525_v23 = vadd.f32 1.0, %v2996_v35 }
 0x1f9   : > { %v3000_v53 = vpop.eup %2999  ;;  %3019 = vrcp.f32 %v1526_v17  ;;  %v1527_v60 = vadd.f32 1.0, %v2998_v31 }
 0x1fa   : > { %v3002_v59 = vpop.eup %3001  ;;  %3021 = vrcp.f32 %v1525_v23  ;;  %v1528_v29 = vadd.f32 1.0, %v3000_v53 }
 0x1fb   : > { %v3004_v4 = vpop.eup %3003  ;;  %3023 = vrcp.f32 %v1527_v60  ;;  %v1530_v48 = vadd.f32 1.0, %v3002_v59  ;;  %v4211_v60 = vld [vmem:[#allocation9_spill] sm:$0xff] }
 0x1fc   : > { %v3006_v39 = vpop.eup %3005  ;;  %3025 = vrcp.f32 %v1528_v29  ;;  %v1529_v36 = vadd.f32 1.0, %v3004_v4  ;;  %v2270_v59 = vmul.f32 -1.442695, %v4211_v60 }
 0x1fd   : > { %v3008_v30 = vpop.eup %3007  ;;  %3027 = vrcp.f32 %v1530_v48  ;;  %v1531_v33 = vadd.f32 1.0, %v3006_v39  ;;  %v4212_v48 = vld [vmem:[#allocation10_spill] sm:$0xff] }
 0x1fe   : > { %v3010_v37 = vpop.eup %3009  ;;  %1903 = vst [vmem:[%s3702_s28 + $0x2d8] sm:$0xff] %v3008_v30  ;;  %3029 = vrcp.f32 %v1529_v36  ;;  %v2269_v39 = vmul.f32 -1.442695, %v4212_v48 }
 0x1ff   : > { %v3012_v38 = vpop.eup %3011  ;;  %1904 = vst [vmem:[%s3702_s28 + $0x2e0] sm:$0xff] %v3010_v37  ;;  %3031 = vrcp.f32 %v1531_v33 }
 0x200   : > { %v3014_v50 = vpop.eup %3013  ;;  %1906 = vst [vmem:[%s3702_s28 + $0x2f0] sm:$0xff] %v3012_v38  ;;  %3033 = vpow2.f32 %v2256_v32  ;;  %v4213_v32 = vld [vmem:[#allocation11_spill] sm:$0xff]  ;;  %v4215_v38 = vld [vmem:[#allocation13_spill] sm:$0xff] }
 0x201   : > { %v3016_v40 = vpop.eup %3015  ;;  %1905 = vst [vmem:[%s3702_s28 + $0x2e8] sm:$0xff] %v3014_v50  ;;  %3035 = vpow2.f32 %v2258_v62  ;;  %v2271_v30 = vmul.f32 -1.442695, %v4213_v32  ;;  %v4214_v62 = vld [vmem:[#allocation12_spill] sm:$0xff]  ;;  %v2274_v3 = vmul.f32 -1.442695, %v4215_v38 }
 0x202   : > { %v3018_v10 = vpop.eup %3017  ;;  %1907 = vst [vmem:[%s3702_s28 + $0x2f8] sm:$0xff] %v3016_v40  ;;  %3037 = vpow2.f32 %v2257_v6  ;;  %v2272_v37 = vmul.f32 -1.442695, %v4214_v62  ;;  %v4216_v50 = vld [vmem:[#allocation14_spill] sm:$0xff] }
 0x203   : > { %v3020_v45 = vpop.eup %3019  ;;  %1908 = vst [vmem:[%s3702_s28 + $0x300] sm:$0xff] %v3018_v10  ;;  %3039 = vpow2.f32 %v2259_v20 }
 0x204   : > { %v3022_v19 = vpop.eup %3021  ;;  %1910 = vst [vmem:[%s3702_s28 + $0x310] sm:$0xff] %v3020_v45  ;;  %3041 = vpow2.f32 %v2260_v14  ;;  %v2273_v14 = vmul.f32 -1.442695, %v4216_v50 }
 0x205   : > { %v3024_v47 = vpop.eup %3023  ;;  %1909 = vst [vmem:[%s3702_s28 + $0x308] sm:$0xff] %v3022_v19  ;;  %3043 = vpow2.f32 %v2262_v16  ;;  %v2275_v16 = vmul.f32 -1.442695, %v3986_v24  ;;  %v2278_v19 = vmul.f32 -1.442695, %v3990_v34 }
 0x206   : > { %v3026_v13 = vpop.eup %3025  ;;  %1911 = vst [vmem:[%s3702_s28 + $0x318] sm:$0xff] %v3024_v47  ;;  %3045 = vpow2.f32 %v2261_v41  ;;  %v4217_v41 = vld [vmem:[#allocation15_spill] sm:$0xff]  ;;  %v4218_v47 = vld [vmem:[#allocation16_spill] sm:$0xff] }
 0x207   : > { %v3028_v56 = vpop.eup %3027  ;;  %1912 = vst [vmem:[%s3702_s28 + $0x320] sm:$0xff] %v3026_v13  ;;  %3047 = vpow2.f32 %v2263_v51  ;;  %v2276_v45 = vmul.f32 -1.442695, %v4217_v41  ;;  %v4219_v13 = vld [vmem:[#allocation17_spill] sm:$0xff] }
 0x208   : > { %v3030_v21 = vpop.eup %3029  ;;  %1914 = vst [vmem:[%s3702_s28 + $0x330] sm:$0xff] %v3028_v56  ;;  %3049 = vpow2.f32 %v2264_v63 }
 0x209   : > { %v3032_v25 = vpop.eup %3031  ;;  %1913 = vst [vmem:[%s3702_s28 + $0x328] sm:$0xff] %v3030_v21  ;;  %3051 = vpow2.f32 %v2266_v52  ;;  %v2277_v52 = vmul.f32 -1.442695, %v4218_v47 }
 0x20a   : > { %v3034_v15 = vpop.eup %3033  ;;  %1915 = vst [vmem:[%s3702_s28 + $0x338] sm:$0xff] %v3032_v25  ;;  %3053 = vpow2.f32 %v2265_v26  ;;  %v2279_v26 = vmul.f32 -1.442695, %v4219_v13 }
 0x20b   : > { %v3036_v1 = vpop.eup %3035  ;;  %v1532_v54 = vadd.f32 1.0, %v3034_v15  ;;  %3055 = vpow2.f32 %v2267_v58 }
 0x20c   : > { %v3038_v9 = vpop.eup %3037  ;;  %v1534_v22 = vadd.f32 1.0, %v3036_v1  ;;  %3057 = vpow2.f32 %v2268_v61 }
 0x20d   : > { %v3040_v8 = vpop.eup %3039  ;;  %3059 = vrcp.f32 %v1532_v54  ;;  %v1533_v5 = vadd.f32 1.0, %v3038_v9 }
 0x20e   : > { %v3042_v7 = vpop.eup %3041  ;;  %3061 = vrcp.f32 %v1534_v22  ;;  %v1535_v43 = vadd.f32 1.0, %v3040_v8 }
 0x20f   : > { %v3044_v27 = vpop.eup %3043  ;;  %3063 = vrcp.f32 %v1533_v5  ;;  %v1536_v46 = vadd.f32 1.0, %v3042_v7 }
 0x210   : > { %v3046_v11 = vpop.eup %3045  ;;  %3065 = vrcp.f32 %v1535_v43  ;;  %v1538_v55 = vadd.f32 1.0, %v3044_v27 }
 0x211   : > { %v3048_v2 = vpop.eup %3047  ;;  %3067 = vrcp.f32 %v1536_v46  ;;  %v1537_v42 = vadd.f32 1.0, %v3046_v11 }
 0x212   : > { %v3050_v18 = vpop.eup %3049  ;;  %3069 = vrcp.f32 %v1538_v55  ;;  %v1539_v12 = vadd.f32 1.0, %v3048_v2 }
 0x213   : > { %v3052_v57 = vpop.eup %3051  ;;  %3071 = vrcp.f32 %v1537_v42  ;;  %v1540_v28 = vadd.f32 1.0, %v3050_v18 }
 0x214   : > { %v3054_v44 = vpop.eup %3053  ;;  %3073 = vrcp.f32 %v1539_v12  ;;  %v1542_v35 = vadd.f32 1.0, %v3052_v57 }
 0x215   : > { %v3056_v17 = vpop.eup %3055  ;;  %3075 = vrcp.f32 %v1540_v28  ;;  %v1541_v31 = vadd.f32 1.0, %v3054_v44 }
 0x216   : > { %v3058_v23 = vpop.eup %3057  ;;  %3077 = vrcp.f32 %v1542_v35  ;;  %v1543_v53 = vadd.f32 1.0, %v3056_v17 }
 0x217   : > { %v3060_v29 = vpop.eup %3059  ;;  %3079 = vrcp.f32 %v1541_v31  ;;  %v1544_v4 = vadd.f32 1.0, %v3058_v23 }
 0x218   : > { %v3062_v36 = vpop.eup %3061  ;;  %1916 = vst [vmem:[%s3702_s28 + $0x340] sm:$0xff] %v3060_v29  ;;  %3081 = vrcp.f32 %v1543_v53 }
 0x219   : > { %v3064_v33 = vpop.eup %3063  ;;  %1918 = vst [vmem:[%s3702_s28 + $0x350] sm:$0xff] %v3062_v36  ;;  %3083 = vrcp.f32 %v1544_v4 }
 0x21a   : > { %v3066_v6 = vpop.eup %3065  ;;  %1917 = vst [vmem:[%s3702_s28 + $0x348] sm:$0xff] %v3064_v33  ;;  %3085 = vpow2.f32 %v2270_v59 }
 0x21b   : > { %v3068_v20 = vpop.eup %3067  ;;  %1919 = vst [vmem:[%s3702_s28 + $0x358] sm:$0xff] %v3066_v6  ;;  %3087 = vpow2.f32 %v2269_v39 }
 0x21c   : > { %v3070_v40 = vpop.eup %3069  ;;  %1920 = vst [vmem:[%s3702_s28 + $0x360] sm:$0xff] %v3068_v20  ;;  %3089 = vpow2.f32 %v2271_v30 }
 0x21d   : > { %v3072_v10 = vpop.eup %3071  ;;  %1922 = vst [vmem:[%s3702_s28 + $0x370] sm:$0xff] %v3070_v40  ;;  %3091 = vpow2.f32 %v2272_v37 }
 0x21e   : > { %v3074_v51 = vpop.eup %3073  ;;  %1921 = vst [vmem:[%s3702_s28 + $0x368] sm:$0xff] %v3072_v10  ;;  %3093 = vpow2.f32 %v2274_v3 }
 0x21f   : > { %v3076_v63 = vpop.eup %3075  ;;  %1923 = vst [vmem:[%s3702_s28 + $0x378] sm:$0xff] %v3074_v51  ;;  %3095 = vpow2.f32 %v2273_v14 }
 0x220   : > { %v3078_v24 = vpop.eup %3077  ;;  %1924 = vst [vmem:[%s3702_s28 + $0x380] sm:$0xff] %v3076_v63  ;;  %3097 = vpow2.f32 %v2275_v16 }
 0x221   : > { %v3080_v56 = vpop.eup %3079  ;;  %1926 = vst [vmem:[%s3702_s28 + $0x390] sm:$0xff] %v3078_v24  ;;  %3099 = vpow2.f32 %v2276_v45 }
 0x222   : > { %v3082_v0 = vpop.eup %3081  ;;  %1925 = vst [vmem:[%s3702_s28 + $0x388] sm:$0xff] %v3080_v56  ;;  %3101 = vpow2.f32 %v2278_v19 }
 0x223   : > { %v3084_v58 = vpop.eup %3083  ;;  %1927 = vst [vmem:[%s3702_s28 + $0x398] sm:$0xff] %v3082_v0  ;;  %3103 = vpow2.f32 %v2277_v52 }
 0x224   : > { %v3086_v34 = vpop.eup %3085  ;;  %1928 = vst [vmem:[%s3702_s28 + $0x3a0] sm:$0xff] %v3084_v58  ;;  %3105 = vpow2.f32 %v2279_v26 }
 0x225   : > { %v3088_v21 = vpop.eup %3087  ;;  %v1546_v49 = vadd.f32 1.0, %v3086_v34 }
 0x226   : > { %v3090_v61 = vpop.eup %3089  ;;  %v1545_v25 = vadd.f32 1.0, %v3088_v21 }
 0x227   : > { %v3092_v15 = vpop.eup %3091  ;;  %3107 = vrcp.f32 %v1546_v49  ;;  %v1547_v1 = vadd.f32 1.0, %v3090_v61 }
 0x228   : > { %v3094_v54 = vpop.eup %3093  ;;  %3109 = vrcp.f32 %v1545_v25  ;;  %v1548_v9 = vadd.f32 1.0, %v3092_v15 }
 0x229   : > { %v3096_v22 = vpop.eup %3095  ;;  %3111 = vrcp.f32 %v1547_v1  ;;  %v1550_v8 = vadd.f32 1.0, %v3094_v54 }
 0x22a   : > { %v3098_v5 = vpop.eup %3097  ;;  %3113 = vrcp.f32 %v1548_v9  ;;  %v1549_v7 = vadd.f32 1.0, %v3096_v22 }
 0x22b   : > { %v3100_v43 = vpop.eup %3099  ;;  %3115 = vrcp.f32 %v1550_v8  ;;  %v1551_v27 = vadd.f32 1.0, %v3098_v5 }
 0x22c   : > { %v3102_v46 = vpop.eup %3101  ;;  %3117 = vrcp.f32 %v1549_v7  ;;  %v1552_v11 = vadd.f32 1.0, %v3100_v43 }
 0x22d   : > { %v3104_v55 = vpop.eup %3103  ;;  %3119 = vrcp.f32 %v1551_v27  ;;  %v1554_v2 = vadd.f32 1.0, %v3102_v46 }
 0x22e   : > { %v3106_v42 = vpop.eup %3105  ;;  %3121 = vrcp.f32 %v1552_v11  ;;  %v1553_v18 = vadd.f32 1.0, %v3104_v55 }
 0x22f   : > { %3123 = vrcp.f32 %v1554_v2  ;;  %v1555_v12 = vadd.f32 1.0, %v3106_v42 }
 0x230   : > { %3125 = vrcp.f32 %v1553_v18 }
 0x231   : > { %v3108_v57 = vpop.eup %3107  ;;  %3127 = vrcp.f32 %v1555_v12 }
 0x232   : > { %v3110_v28 = vpop.eup %3109  ;;  %1930 = vst [vmem:[%s3702_s28 + $0x3b0] sm:$0xff] %v3108_v57 }
 0x233   : > { %v3112_v44 = vpop.eup %3111  ;;  %1929 = vst [vmem:[%s3702_s28 + $0x3a8] sm:$0xff] %v3110_v28 }
 0x234   : > { %v3114_v35 = vpop.eup %3113  ;;  %1931 = vst [vmem:[%s3702_s28 + $0x3b8] sm:$0xff] %v3112_v44 }
 0x235   : > { %v3116_v17 = vpop.eup %3115  ;;  %1932 = vst [vmem:[%s3702_s28 + $0x3c0] sm:$0xff] %v3114_v35 }
 0x236   : > { %v3118_v31 = vpop.eup %3117  ;;  %1934 = vst [vmem:[%s3702_s28 + $0x3d0] sm:$0xff] %v3116_v17 }
 0x237   : > { %v3120_v23 = vpop.eup %3119  ;;  %1933 = vst [vmem:[%s3702_s28 + $0x3c8] sm:$0xff] %v3118_v31 }
 0x238   : > { %v3122_v53 = vpop.eup %3121  ;;  %1935 = vst [vmem:[%s3702_s28 + $0x3d8] sm:$0xff] %v3120_v23 }
 0x239   : > { %v3124_v60 = vpop.eup %3123  ;;  %1936 = vst [vmem:[%s3702_s28 + $0x3e0] sm:$0xff] %v3122_v53 }
 0x23a   : > { %v3126_v59 = vpop.eup %3125  ;;  %1938 = vst [vmem:[%s3702_s28 + $0x3f0] sm:$0xff] %v3124_v60 }
 0x23b   : > { %v3128_v29 = vpop.eup %3127  ;;  %1937 = vst [vmem:[%s3702_s28 + $0x3e8] sm:$0xff] %v3126_v59 }
 0x23c   : > { %1939 = vst [vmem:[%s3702_s28 + $0x3f8] sm:$0xff] %v3128_v29 }
 0x23d   : > { %3142 = shalt.err (!%p3139_p3)
}
 0x23e   : > { %s3143_s14 = scalar_lea.hbm %s4137_s4, 16384  ;;  %s3147_s21 = scalar_lea.hbm %s4189_s2, 32768 }
 0x23f   : > { %p3144_p4 = scmp.ne.s32.totalorder %s4137_s4, %s3143_s14  ;;  %p3148_p9 = scmp.lt.u32.totalorder %s4137_s4, %s4189_s2 }
 0x240   : > { %p3149_p10 = scmp.lt.u32.totalorder %s3147_s21, %s3143_s14  ;;  %p3151_p12 = scmp.lt.u32.totalorder %s3143_s14, %s4137_s4 }
 0x241   : > { %p3145_p7 = pnand %p3144_p4, %p3249_p5 }
 0x242   : > { %p3150_p11 = por %p3149_p10, %p3148_p9 }
 0x243   : > { %p3146_p8 = pneg %p3145_p7 }
 0x244   : > { %p3152_p13 = por %p3151_p12, %p3150_p11 }
 0x246   : > { %p3153_p0 = pnand %p3152_p13, %p3146_p8 }
 0x248   : > { %3156 = shalt.err (!%p3153_p0)
}
 0x249   : > { %s3194_s24 = smov 512   ;;  %s3195_s25 = smov 32  }
 0x24a   : > { %2576 = dma.vmem_to_hbm [thread:$0]  (%p3249_p5), %s4139_s29, 16384, %s4137_s4, %s4146_s13, %s3194_s24, %s3194_s24, %s3195_s25  }
 0x24b PF: > { %p2582_p1 = scmp.ge.s32.totalorder %s3191_s12, 2  ;;  %s1970_s27 = sand.u32 1, %s3179_s9  }
 0x24c   : > { %s1971_s28 = scalar_lea.sflag [#allocation3], %s1970_s27 }
 0x24d   : > { %p2579_p2 = pnand %p2582_p1, %p3253_p6 }
 0x24f   : > { %3174 = dma.done.wait (!%p2579_p2), %s1971_s28, 16384  }
 0x250   : > { %3176 = vsyncadd (!%p2579_p2), %s1971_s28, 4294950912  ;;  %p12_p3 = scmp.ge.s32.totalorder %s3236_s15, 4   ;;  %s4220_s9 = smov %s3183_s10 }
 0x251   : > { %s4221_s10 = smov %s3187_s11  ;;  %s4222_s11 = smov %s3247_s18 }
 0x252   : > { %s4223_s12 = smov %s3236_s15  ;;  %14 = sbr.rel (!%p12_p3) target bundleno = 3 (0x3), region = 63 }
 0x259   :  { %1976 = vsyncpa [#allocation3], 1 }
 0x25a   :  { %1978 = vsyncpa [#allocation3 + $0x1], 1 }

</bundles_post_ra>
